<compile_context>
chip_gen: v7x
topology: tpu7x:2x2x1
jax: 0.10.0
libtpu: 0.0.40
codegen_flags: <defaults>
</compile_context>

<pallas_src>
import math

import jax
import jax.numpy as jnp
from jax import lax
from jax.experimental import pallas as pl
from jax.experimental.pallas import tpu as pltpu

# ---- model dimensions (small, consistent with a BERT-like encoder) ----
BATCH = 2
SEQ = 8
HIDDEN = 32
NUM_HEADS = 2
HEAD_DIM = HIDDEN // NUM_HEADS
FFN = 64
NUM_LAYERS = 2
VOCAB = 100
LN_EPS = 1e-12
LANE = 128

# vector-parameter slab layout: rows 0/1 = embedding LN gamma/beta, then per
# layer 8 rows: [bqkv(96) | bo | ln1_g | ln1_b | b1(64) | b2 | ln2_g | ln2_b]
VEC_ROWS_PER_LAYER = 8
NVEC = 2 + NUM_LAYERS * VEC_ROWS_PER_LAYER


def _layer_norm(x, gamma, beta):
    mu = jnp.mean(x, axis=-1, keepdims=True)
    var = jnp.mean((x - mu) ** 2, axis=-1, keepdims=True)
    return (x - mu) * lax.rsqrt(var + LN_EPS) * gamma + beta


# ----------------------------------------------------------------------
# Single fused Pallas kernel.
# ----------------------------------------------------------------------
def fused_encoder_kernel(
    ids_ref,      # (B*S,) int32  token ids, SMEM
    mask_ref,     # (B, S) f32    attention mask (1.0 = token, 0.0 = pad)
    tok_ref,      # (VOCAB, 1, H) token embedding table (leading-dim gather)
    pos_ref,      # (B*S, H)      positional embeddings tiled over batch
    w_attn_ref,   # (L, H, 4H)    [Wq | Wk | Wv | Wo] per layer (128 lanes)
    w1_ref,       # (L, H, F)
    w2_ref,       # (L, F, H)
    vec_ref,      # (NVEC, 128)   all biases / LN params, zero padded to 128
    out_ref,      # (B, H)        pooled output
):
    scale = 1.0 / math.sqrt(HEAD_DIM)
    V = vec_ref[...]                                     # (NVEC, 128)

    # ---- fused embedding gather + positional add (ids read from SMEM) ----
    rows = [tok_ref[ids_ref[r]] for r in range(BATCH * SEQ)]     # each (1, H)
    x = jnp.concatenate(rows, axis=0) + pos_ref[...]             # (B*S, H)

    # ---- embedding LayerNorm ----
    x = _layer_norm(x, V[0:1, :HIDDEN], V[1:2, :HIDDEN])

    mask = mask_ref[...]                                 # (B, S)
    bias3 = ((1.0 - mask) * -1e9)[:, None, :]            # (B, 1, S)

    # Static unroll over layers; everything stays in vregs / VMEM.
    for l in range(NUM_LAYERS):
        base = 2 + l * VEC_ROWS_PER_LAYER
        W = w_attn_ref[l]                                # (H, 4H)

        # Fused QKV projection: one (16,32)x(32,128) matmul (the trailing
        # 32 lanes compute x@Wo which is discarded -> free on the MXU).
        proj = jnp.dot(x, W, preferred_element_type=jnp.float32) + V[base:base + 1, :]
        q = proj[:, 0:HIDDEN]
        k = proj[:, HIDDEN:2 * HIDDEN]
        v = proj[:, 2 * HIDDEN:3 * HIDDEN]

        # Attention, batched over the batch dim per head. Head-concat is
        # folded into per-head Wo matmuls accumulated in vregs (no VMEM
        # scratch, no masked partial stores, no store->load round trip).
        attn_out = None
        for h in range(NUM_HEADS):
            cs = slice(h * HEAD_DIM, (h + 1) * HEAD_DIM)
            qh = q[:, cs].reshape(BATCH, SEQ, HEAD_DIM)
            kh = k[:, cs].reshape(BATCH, SEQ, HEAD_DIM)
            vh = v[:, cs].reshape(BATCH, SEQ, HEAD_DIM)

            s = jnp.einsum('bqd,bkd->bqk', qh, kh,
                           preferred_element_type=jnp.float32) * scale + bias3
            m = jnp.max(s, axis=-1, keepdims=True)
            e = jnp.exp(s - m)
            p = e * pl.reciprocal(jnp.sum(e, axis=-1, keepdims=True), approx=True)

            ctx = jnp.einsum('bqk,bkd->bqd', p, vh,
                             preferred_element_type=jnp.float32)     # (B,S,HD)
            ctx2 = ctx.reshape(BATCH * SEQ, HEAD_DIM)                # (B*S,HD)
            part = jnp.dot(ctx2, W[cs, 3 * HIDDEN:4 * HIDDEN],
                           preferred_element_type=jnp.float32)       # (B*S,H)
            attn_out = part if attn_out is None else attn_out + part
        attn_out = attn_out + V[base + 1:base + 2, :HIDDEN]

        h1 = _layer_norm(x + attn_out,
                         V[base + 2:base + 3, :HIDDEN],
                         V[base + 3:base + 4, :HIDDEN])

        ff = jnp.dot(h1, w1_ref[l], preferred_element_type=jnp.float32) \
            + V[base + 4:base + 5, :FFN]
        ff = jax.nn.gelu(ff, approximate=True)
        ff = jnp.dot(ff, w2_ref[l], preferred_element_type=jnp.float32) \
            + V[base + 5:base + 6, :HIDDEN]
        x = _layer_norm(h1 + ff,
                        V[base + 6:base + 7, :HIDDEN],
                        V[base + 7:base + 8, :HIDDEN])

    # ---- masked mean pooling: one block-diagonal matmul + one full store ----
    row = lax.broadcasted_iota(jnp.int32, (BATCH, BATCH * SEQ), 0)
    col = lax.broadcasted_iota(jnp.int32, (BATCH, BATCH * SEQ), 1)
    in_block = (col >= row * SEQ) & (col < (row + 1) * SEQ)          # (B, B*S)
    tiled = jnp.tile(mask, (1, BATCH))                               # (B, B*S)
    pool = jnp.where(in_block, tiled, 0.0)
    summed = jnp.dot(pool, x, preferred_element_type=jnp.float32)    # (B, H)
    denom = jnp.maximum(jnp.sum(pool, axis=1, keepdims=True), 1e-9)  # (B, 1)
    out_ref[...] = summed * pl.reciprocal(denom, approx=True)


# ----------------------------------------------------------------------
# Wrapper: one gridless pallas_call, ids in SMEM, everything else in VMEM.
# ----------------------------------------------------------------------
def run_fused_forward(input_ids, attention_mask, packed):
    tok3d, pos_tiled, w_attn, w1s, w2s, vecs = packed
    ids = input_ids.reshape(BATCH * SEQ).astype(jnp.int32)
    smem = pltpu.MemorySpace.SMEM
    vmem = pltpu.MemorySpace.VMEM
    return pl.pallas_call(
        fused_encoder_kernel,
        out_shape=jax.ShapeDtypeStruct((BATCH, HIDDEN), jnp.float32),
        in_specs=[pl.BlockSpec(memory_space=smem)]
        + [pl.BlockSpec(memory_space=vmem)] * 7,
        out_specs=pl.BlockSpec(memory_space=vmem),
    )(ids, attention_mask, tok3d, pos_tiled, w_attn, w1s, w2s, vecs)


# ----------------------------------------------------------------------
# Parameter init (deterministic, synthetic — stands in for AutoModel weights)
# ----------------------------------------------------------------------
def init_params(key):
    def dense(k, shape, s=0.02):
        return jax.random.normal(k, shape, jnp.float32) * s

    keys = jax.random.split(key, 3 + NUM_LAYERS)
    tok_emb = dense(keys[0], (VOCAB, HIDDEN))
    pos_emb = dense(keys[1], (SEQ, HIDDEN))
    ek = jax.random.split(keys[2], 2)
    emb_gamma = 1.0 + dense(ek[0], (HIDDEN,))
    emb_beta = dense(ek[1], (HIDDEN,))

    layers = []
    for l in range(NUM_LAYERS):
        lk = jax.random.split(keys[3 + l], 16)
        layers.append(dict(
            wq=dense(lk[0], (HIDDEN, HIDDEN)), bq=dense(lk[1], (HIDDEN,)),
            wk=dense(lk[2], (HIDDEN, HIDDEN)), bk=dense(lk[3], (HIDDEN,)),
            wv=dense(lk[4], (HIDDEN, HIDDEN)), bv=dense(lk[5], (HIDDEN,)),
            wo=dense(lk[6], (HIDDEN, HIDDEN)), bo=dense(lk[7], (HIDDEN,)),
            g1=1.0 + dense(lk[8], (HIDDEN,)), be1=dense(lk[9], (HIDDEN,)),
            w1=dense(lk[10], (HIDDEN, FFN)), b1=dense(lk[11], (FFN,)),
            w2=dense(lk[12], (FFN, HIDDEN)), b2=dense(lk[13], (HIDDEN,)),
            g2=1.0 + dense(lk[14], (HIDDEN,)), be2=dense(lk[15], (HIDDEN,)),
        ))
    return tok_emb, pos_emb, emb_gamma, emb_beta, layers


def _pad_lane(v):
    return jnp.pad(v, (0, LANE - v.shape[0]))


def pack_params(tok_emb, pos_emb, emb_gamma, emb_beta, layers):
    tok3d = tok_emb.reshape(VOCAB, 1, HIDDEN)            # leading-dim gather
    pos_tiled = jnp.tile(pos_emb, (BATCH, 1))            # (B*S, H)
    w_attn = jnp.stack([jnp.concatenate(
        [L['wq'], L['wk'], L['wv'], L['wo']], axis=1) for L in layers])  # (L,H,4H)
    w1s = jnp.stack([L['w1'] for L in layers])           # (L, H, F)
    w2s = jnp.stack([L['w2'] for L in layers])           # (L, F, H)
    rows = [_pad_lane(emb_gamma), _pad_lane(emb_beta)]
    for L in layers:
        bqkv = jnp.concatenate([L['bq'], L['bk'], L['bv']])
        rows += [_pad_lane(bqkv), _pad_lane(L['bo']),
                 _pad_lane(L['g1']), _pad_lane(L['be1']),
                 _pad_lane(L['b1']), _pad_lane(L['b2']),
                 _pad_lane(L['g2']), _pad_lane(L['be2'])]
    vecs = jnp.stack(rows)                               # (NVEC, 128)
    return tok3d, pos_tiled, w_attn, w1s, w2s, vecs


# ----------------------------------------------------------------------
# Pure-JAX reference (same math) for correctness check
# ----------------------------------------------------------------------
def ref_forward(input_ids, attention_mask, tok_emb, pos_emb,
                emb_gamma, emb_beta, layers):
    x = tok_emb[input_ids] + pos_emb[None, :, :]
    x = _layer_norm(x, emb_gamma, emb_beta)
    bias = ((1.0 - attention_mask) * -1e9)[:, None, :]
    scale = 1.0 / math.sqrt(HEAD_DIM)
    for L in layers:
        q = x @ L['wq'] + L['bq']
        k = x @ L['wk'] + L['bk']
        v = x @ L['wv'] + L['bv']
        heads = []
        for h in range(NUM_HEADS):
            sl = slice(h * HEAD_DIM, (h + 1) * HEAD_DIM)
            s = jnp.einsum('bqd,bkd->bqk', q[..., sl], k[..., sl]) * scale + bias
            p = jax.nn.softmax(s, axis=-1)
            heads.append(jnp.einsum('bqk,bkd->bqd', p, v[..., sl]))
        ctx = jnp.concatenate(heads, axis=-1)
        h1 = _layer_norm(x + ctx @ L['wo'] + L['bo'], L['g1'], L['be1'])
        ff = jax.nn.gelu(h1 @ L['w1'] + L['b1'], approximate=True) @ L['w2'] + L['b2']
        x = _layer_norm(h1 + ff, L['g2'], L['be2'])
    m = attention_mask[:, :, None]
    return jnp.sum(x * m, axis=1) / jnp.maximum(jnp.sum(m, axis=1), 1e-9)


if __name__ == "__main__":
    key = jax.random.PRNGKey(0)
    k_param, k_ids = jax.random.split(key)
    tok_emb, pos_emb, emb_gamma, emb_beta, layers = init_params(k_param)
    packed = pack_params(tok_emb, pos_emb, emb_gamma, emb_beta, layers)

    input_ids = jax.random.randint(k_ids, (BATCH, SEQ), 0, VOCAB, dtype=jnp.int32)
    lengths = jnp.array([SEQ, 5])
    attention_mask = (jnp.arange(SEQ)[None, :] < lengths[:, None]).astype(jnp.float32)

    fwd = jax.jit(run_fused_forward)
    out = jax.block_until_ready(fwd(input_ids, attention_mask, packed))

    ref = ref_forward(input_ids, attention_mask, tok_emb, pos_emb,
                      emb_gamma, emb_beta, layers)
    assert out.shape == (BATCH, HIDDEN)
    # approx reciprocal in softmax/pooling shifts numerics slightly vs. the
    # exact-division reference, hence the slightly looser tolerance.
    assert jnp.allclose(out, ref, atol=2e-3, rtol=2e-3), "mismatch vs reference"
    print("KERNEL_OK")
</pallas_src>

<mosaic_0001>
module attributes {stable_mosaic.version = 11 : i64} {
  func.func @fused_encoder_kernel(%arg0: memref<16xi32, #tpu.memory_space<smem>>, %arg1: memref<2x8xf32, #tpu.memory_space<vmem>>, %arg2: memref<100x1x32xf32, #tpu.memory_space<vmem>>, %arg3: memref<16x32xf32, #tpu.memory_space<vmem>>, %arg4: memref<2x32x128xf32, #tpu.memory_space<vmem>>, %arg5: memref<2x32x64xf32, #tpu.memory_space<vmem>>, %arg6: memref<2x64x32xf32, #tpu.memory_space<vmem>>, %arg7: memref<18x128xf32, #tpu.memory_space<vmem>>, %arg8: memref<2x32xf32, #tpu.memory_space<vmem>>) attributes {dimension_semantics = [], scalar_prefetch = 0 : i64, scratch_operands = 0 : i64, tpu.core_type = #tpu.core_type<tc>} {
    %c0 = arith.constant 0 : index
    %c0_0 = arith.constant 0 : index
    %0 = vector.load %arg7[%c0, %c0_0] : memref<18x128xf32, #tpu.memory_space<vmem>>, vector<18x128xf32>
    %c0_1 = arith.constant 0 : index
    %1 = memref.load %arg0[%c0_1] : memref<16xi32, #tpu.memory_space<smem>>
    %2 = arith.index_cast %1 : i32 to index
    %c0_2 = arith.constant 0 : index
    %c0_3 = arith.constant 0 : index
    %3 = vector.load %arg2[%2, %c0_2, %c0_3] : memref<100x1x32xf32, #tpu.memory_space<vmem>>, vector<1x1x32xf32>
    %4 = vector.shape_cast %3 : vector<1x1x32xf32> to vector<1x32xf32>
    %c1 = arith.constant 1 : index
    %5 = memref.load %arg0[%c1] : memref<16xi32, #tpu.memory_space<smem>>
    %6 = arith.index_cast %5 : i32 to index
    %c0_4 = arith.constant 0 : index
    %c0_5 = arith.constant 0 : index
    %7 = vector.load %arg2[%6, %c0_4, %c0_5] : memref<100x1x32xf32, #tpu.memory_space<vmem>>, vector<1x1x32xf32>
    %8 = vector.shape_cast %7 : vector<1x1x32xf32> to vector<1x32xf32>
    %c2 = arith.constant 2 : index
    %9 = memref.load %arg0[%c2] : memref<16xi32, #tpu.memory_space<smem>>
    %10 = arith.index_cast %9 : i32 to index
    %c0_6 = arith.constant 0 : index
    %c0_7 = arith.constant 0 : index
    %11 = vector.load %arg2[%10, %c0_6, %c0_7] : memref<100x1x32xf32, #tpu.memory_space<vmem>>, vector<1x1x32xf32>
    %12 = vector.shape_cast %11 : vector<1x1x32xf32> to vector<1x32xf32>
    %c3 = arith.constant 3 : index
    %13 = memref.load %arg0[%c3] : memref<16xi32, #tpu.memory_space<smem>>
    %14 = arith.index_cast %13 : i32 to index
    %c0_8 = arith.constant 0 : index
    %c0_9 = arith.constant 0 : index
    %15 = vector.load %arg2[%14, %c0_8, %c0_9] : memref<100x1x32xf32, #tpu.memory_space<vmem>>, vector<1x1x32xf32>
    %16 = vector.shape_cast %15 : vector<1x1x32xf32> to vector<1x32xf32>
    %c4 = arith.constant 4 : index
    %17 = memref.load %arg0[%c4] : memref<16xi32, #tpu.memory_space<smem>>
    %18 = arith.index_cast %17 : i32 to index
    %c0_10 = arith.constant 0 : index
    %c0_11 = arith.constant 0 : index
    %19 = vector.load %arg2[%18, %c0_10, %c0_11] : memref<100x1x32xf32, #tpu.memory_space<vmem>>, vector<1x1x32xf32>
    %20 = vector.shape_cast %19 : vector<1x1x32xf32> to vector<1x32xf32>
    %c5 = arith.constant 5 : index
    %21 = memref.load %arg0[%c5] : memref<16xi32, #tpu.memory_space<smem>>
    %22 = arith.index_cast %21 : i32 to index
    %c0_12 = arith.constant 0 : index
    %c0_13 = arith.constant 0 : index
    %23 = vector.load %arg2[%22, %c0_12, %c0_13] : memref<100x1x32xf32, #tpu.memory_space<vmem>>, vector<1x1x32xf32>
    %24 = vector.shape_cast %23 : vector<1x1x32xf32> to vector<1x32xf32>
    %c6 = arith.constant 6 : index
    %25 = memref.load %arg0[%c6] : memref<16xi32, #tpu.memory_space<smem>>
    %26 = arith.index_cast %25 : i32 to index
    %c0_14 = arith.constant 0 : index
    %c0_15 = arith.constant 0 : index
    %27 = vector.load %arg2[%26, %c0_14, %c0_15] : memref<100x1x32xf32, #tpu.memory_space<vmem>>, vector<1x1x32xf32>
    %28 = vector.shape_cast %27 : vector<1x1x32xf32> to vector<1x32xf32>
    %c7 = arith.constant 7 : index
    %29 = memref.load %arg0[%c7] : memref<16xi32, #tpu.memory_space<smem>>
    %30 = arith.index_cast %29 : i32 to index
    %c0_16 = arith.constant 0 : index
    %c0_17 = arith.constant 0 : index
    %31 = vector.load %arg2[%30, %c0_16, %c0_17] : memref<100x1x32xf32, #tpu.memory_space<vmem>>, vector<1x1x32xf32>
    %32 = vector.shape_cast %31 : vector<1x1x32xf32> to vector<1x32xf32>
    %c8 = arith.constant 8 : index
    %33 = memref.load %arg0[%c8] : memref<16xi32, #tpu.memory_space<smem>>
    %34 = arith.index_cast %33 : i32 to index
    %c0_18 = arith.constant 0 : index
    %c0_19 = arith.constant 0 : index
    %35 = vector.load %arg2[%34, %c0_18, %c0_19] : memref<100x1x32xf32, #tpu.memory_space<vmem>>, vector<1x1x32xf32>
    %36 = vector.shape_cast %35 : vector<1x1x32xf32> to vector<1x32xf32>
    %c9 = arith.constant 9 : index
    %37 = memref.load %arg0[%c9] : memref<16xi32, #tpu.memory_space<smem>>
    %38 = arith.index_cast %37 : i32 to index
    %c0_20 = arith.constant 0 : index
    %c0_21 = arith.constant 0 : index
    %39 = vector.load %arg2[%38, %c0_20, %c0_21] : memref<100x1x32xf32, #tpu.memory_space<vmem>>, vector<1x1x32xf32>
    %40 = vector.shape_cast %39 : vector<1x1x32xf32> to vector<1x32xf32>
    %c10 = arith.constant 10 : index
    %41 = memref.load %arg0[%c10] : memref<16xi32, #tpu.memory_space<smem>>
    %42 = arith.index_cast %41 : i32 to index
    %c0_22 = arith.constant 0 : index
    %c0_23 = arith.constant 0 : index
    %43 = vector.load %arg2[%42, %c0_22, %c0_23] : memref<100x1x32xf32, #tpu.memory_space<vmem>>, vector<1x1x32xf32>
    %44 = vector.shape_cast %43 : vector<1x1x32xf32> to vector<1x32xf32>
    %c11 = arith.constant 11 : index
    %45 = memref.load %arg0[%c11] : memref<16xi32, #tpu.memory_space<smem>>
    %46 = arith.index_cast %45 : i32 to index
    %c0_24 = arith.constant 0 : index
    %c0_25 = arith.constant 0 : index
    %47 = vector.load %arg2[%46, %c0_24, %c0_25] : memref<100x1x32xf32, #tpu.memory_space<vmem>>, vector<1x1x32xf32>
    %48 = vector.shape_cast %47 : vector<1x1x32xf32> to vector<1x32xf32>
    %c12 = arith.constant 12 : index
    %49 = memref.load %arg0[%c12] : memref<16xi32, #tpu.memory_space<smem>>
    %50 = arith.index_cast %49 : i32 to index
    %c0_26 = arith.constant 0 : index
    %c0_27 = arith.constant 0 : index
    %51 = vector.load %arg2[%50, %c0_26, %c0_27] : memref<100x1x32xf32, #tpu.memory_space<vmem>>, vector<1x1x32xf32>
    %52 = vector.shape_cast %51 : vector<1x1x32xf32> to vector<1x32xf32>
    %c13 = arith.constant 13 : index
    %53 = memref.load %arg0[%c13] : memref<16xi32, #tpu.memory_space<smem>>
    %54 = arith.index_cast %53 : i32 to index
    %c0_28 = arith.constant 0 : index
    %c0_29 = arith.constant 0 : index
    %55 = vector.load %arg2[%54, %c0_28, %c0_29] : memref<100x1x32xf32, #tpu.memory_space<vmem>>, vector<1x1x32xf32>
    %56 = vector.shape_cast %55 : vector<1x1x32xf32> to vector<1x32xf32>
    %c14 = arith.constant 14 : index
    %57 = memref.load %arg0[%c14] : memref<16xi32, #tpu.memory_space<smem>>
    %58 = arith.index_cast %57 : i32 to index
    %c0_30 = arith.constant 0 : index
    %c0_31 = arith.constant 0 : index
    %59 = vector.load %arg2[%58, %c0_30, %c0_31] : memref<100x1x32xf32, #tpu.memory_space<vmem>>, vector<1x1x32xf32>
    %60 = vector.shape_cast %59 : vector<1x1x32xf32> to vector<1x32xf32>
    %c15 = arith.constant 15 : index
    %61 = memref.load %arg0[%c15] : memref<16xi32, #tpu.memory_space<smem>>
    %62 = arith.index_cast %61 : i32 to index
    %c0_32 = arith.constant 0 : index
    %c0_33 = arith.constant 0 : index
    %63 = vector.load %arg2[%62, %c0_32, %c0_33] : memref<100x1x32xf32, #tpu.memory_space<vmem>>, vector<1x1x32xf32>
    %64 = vector.shape_cast %63 : vector<1x1x32xf32> to vector<1x32xf32>
    %65 = tpu.concatenate %4, %8, %12, %16, %20, %24, %28, %32, %36, %40, %44, %48, %52, %56, %60, %64 in 0 : vector<1x32xf32>, vector<1x32xf32>, vector<1x32xf32>, vector<1x32xf32>, vector<1x32xf32>, vector<1x32xf32>, vector<1x32xf32>, vector<1x32xf32>, vector<1x32xf32>, vector<1x32xf32>, vector<1x32xf32>, vector<1x32xf32>, vector<1x32xf32>, vector<1x32xf32>, vector<1x32xf32>, vector<1x32xf32> -> vector<16x32xf32>
    %c0_34 = arith.constant 0 : index
    %c0_35 = arith.constant 0 : index
    %66 = vector.load %arg3[%c0_34, %c0_35] : memref<16x32xf32, #tpu.memory_space<vmem>>, vector<16x32xf32>
    %67 = arith.addf %65, %66 : vector<16x32xf32>
    %68 = vector.extract_strided_slice %0 {offsets = [0, 0], sizes = [1, 32], strides = [1, 1]} : vector<18x128xf32> to vector<1x32xf32>
    %69 = vector.extract_strided_slice %0 {offsets = [1, 0], sizes = [1, 32], strides = [1, 1]} : vector<18x128xf32> to vector<1x32xf32>
    %cst = arith.constant dense<0.000000e+00> : vector<16xf32>
    %70 = vector.multi_reduction <add>, %67, %cst [1] : vector<16x32xf32> to vector<16xf32>
    %71 = vector.shape_cast %70 : vector<16xf32> to vector<16x1xf32>
    %cst_36 = arith.constant 3.200000e+01 : f32
    %72 = vector.broadcast %cst_36 : f32 to vector<16x1xf32>
    %73 = arith.divf %71, %72 : vector<16x1xf32>
    %74 = vector.broadcast %73 : vector<16x1xf32> to vector<16x32xf32>
    %75 = arith.subf %67, %74 : vector<16x32xf32>
    %76 = arith.mulf %75, %75 : vector<16x32xf32>
    %cst_37 = arith.constant dense<0.000000e+00> : vector<16xf32>
    %77 = vector.multi_reduction <add>, %76, %cst_37 [1] : vector<16x32xf32> to vector<16xf32>
    %78 = vector.shape_cast %77 : vector<16xf32> to vector<16x1xf32>
    %cst_38 = arith.constant 3.200000e+01 : f32
    %79 = vector.broadcast %cst_38 : f32 to vector<16x1xf32>
    %80 = arith.divf %78, %79 : vector<16x1xf32>
    %81 = vector.broadcast %73 : vector<16x1xf32> to vector<16x32xf32>
    %82 = arith.subf %67, %81 : vector<16x32xf32>
    %cst_39 = arith.constant 9.99999996E-13 : f32
    %83 = vector.broadcast %cst_39 : f32 to vector<16x1xf32>
    %84 = arith.addf %80, %83 : vector<16x1xf32>
    %85 = math.rsqrt %84 : vector<16x1xf32>
    %86 = vector.broadcast %85 : vector<16x1xf32> to vector<16x32xf32>
    %87 = arith.mulf %82, %86 : vector<16x32xf32>
    %88 = vector.broadcast %68 : vector<1x32xf32> to vector<16x32xf32>
    %89 = arith.mulf %87, %88 : vector<16x32xf32>
    %90 = vector.broadcast %69 : vector<1x32xf32> to vector<16x32xf32>
    %91 = arith.addf %89, %90 : vector<16x32xf32>
    %c0_40 = arith.constant 0 : index
    %c0_41 = arith.constant 0 : index
    %92 = vector.load %arg1[%c0_40, %c0_41] : memref<2x8xf32, #tpu.memory_space<vmem>>, vector<2x8xf32>
    %cst_42 = arith.constant 1.000000e+00 : f32
    %93 = vector.broadcast %cst_42 : f32 to vector<2x8xf32>
    %94 = arith.subf %93, %92 : vector<2x8xf32>
    %cst_43 = arith.constant -1.000000e+09 : f32
    %95 = vector.broadcast %cst_43 : f32 to vector<2x8xf32>
    %96 = arith.mulf %94, %95 : vector<2x8xf32>
    %97 = vector.shape_cast %96 : vector<2x8xf32> to vector<2x1x8xf32>
    %c0_44 = arith.constant 0 : index
    %c0_45 = arith.constant 0 : index
    %c0_46 = arith.constant 0 : index
    %98 = vector.load %arg4[%c0_44, %c0_45, %c0_46] : memref<2x32x128xf32, #tpu.memory_space<vmem>>, vector<1x32x128xf32>
    %99 = vector.shape_cast %98 : vector<1x32x128xf32> to vector<32x128xf32>
    %cst_47 = arith.constant dense<0.000000e+00> : vector<16x128xf32>
    %100 = tpu.matmul %91, %99, %cst_47 {dimension_numbers = #tpu.dot_dimension_numbers<[1], [0], [0], [1], [0, 0, 1, 1], [], []>} : vector<16x32xf32>, vector<32x128xf32>, vector<16x128xf32> -> vector<16x128xf32>
    %101 = vector.extract_strided_slice %0 {offsets = [2, 0], sizes = [1, 128], strides = [1, 1]} : vector<18x128xf32> to vector<1x128xf32>
    %102 = vector.broadcast %101 : vector<1x128xf32> to vector<16x128xf32>
    %103 = arith.addf %100, %102 : vector<16x128xf32>
    %104 = vector.extract_strided_slice %103 {offsets = [0, 0], sizes = [16, 32], strides = [1, 1]} : vector<16x128xf32> to vector<16x32xf32>
    %105 = vector.extract_strided_slice %103 {offsets = [0, 32], sizes = [16, 32], strides = [1, 1]} : vector<16x128xf32> to vector<16x32xf32>
    %106 = vector.extract_strided_slice %103 {offsets = [0, 64], sizes = [16, 32], strides = [1, 1]} : vector<16x128xf32> to vector<16x32xf32>
    %107 = vector.extract_strided_slice %104 {offsets = [0, 0], sizes = [16, 16], strides = [1, 1]} : vector<16x32xf32> to vector<16x16xf32>
    %108 = vector.shape_cast %107 : vector<16x16xf32> to vector<2x8x16xf32>
    %109 = vector.extract_strided_slice %105 {offsets = [0, 0], sizes = [16, 16], strides = [1, 1]} : vector<16x32xf32> to vector<16x16xf32>
    %110 = vector.shape_cast %109 : vector<16x16xf32> to vector<2x8x16xf32>
    %111 = vector.extract_strided_slice %106 {offsets = [0, 0], sizes = [16, 16], strides = [1, 1]} : vector<16x32xf32> to vector<16x16xf32>
    %112 = vector.shape_cast %111 : vector<16x16xf32> to vector<2x8x16xf32>
    "tpu.trace_start"() <{level = 10 : i32, message = "bqd,bkd->bqk"}> : () -> ()
    %cst_48 = arith.constant dense<0.000000e+00> : vector<2x8x8xf32>
    %113 = tpu.matmul %108, %110, %cst_48 {dimension_numbers = #tpu.dot_dimension_numbers<[2], [2], [1], [1], [0, 0, 0, 1, 1, 1], [0], [0]>} : vector<2x8x16xf32>, vector<2x8x16xf32>, vector<2x8x8xf32> -> vector<2x8x8xf32>
    "tpu.trace_stop"() : () -> ()
    %cst_49 = arith.constant 2.500000e-01 : f32
    %114 = vector.broadcast %cst_49 : f32 to vector<2x8x8xf32>
    %115 = arith.mulf %113, %114 : vector<2x8x8xf32>
    %116 = vector.broadcast %97 : vector<2x1x8xf32> to vector<2x8x8xf32>
    %117 = arith.addf %115, %116 : vector<2x8x8xf32>
    %cst_50 = arith.constant dense<0xFF800000> : vector<2x8xf32>
    %118 = vector.multi_reduction <maximumf>, %117, %cst_50 [2] : vector<2x8x8xf32> to vector<2x8xf32>
    %119 = vector.shape_cast %118 : vector<2x8xf32> to vector<2x8x1xf32>
    %120 = vector.broadcast %119 : vector<2x8x1xf32> to vector<2x8x8xf32>
    %121 = arith.subf %117, %120 : vector<2x8x8xf32>
    %122 = math.exp %121 : vector<2x8x8xf32>
    %cst_51 = arith.constant dense<0.000000e+00> : vector<2x8xf32>
    %123 = vector.multi_reduction <add>, %122, %cst_51 [2] : vector<2x8x8xf32> to vector<2x8xf32>
    %124 = vector.shape_cast %123 : vector<2x8xf32> to vector<2x8x1xf32>
    %125 = tpu.reciprocal %124 {approx = true} : vector<2x8x1xf32> -> vector<2x8x1xf32>
    %126 = vector.broadcast %125 : vector<2x8x1xf32> to vector<2x8x8xf32>
    %127 = arith.mulf %122, %126 : vector<2x8x8xf32>
    "tpu.trace_start"() <{level = 10 : i32, message = "bqk,bkd->bqd"}> : () -> ()
    %cst_52 = arith.constant dense<0.000000e+00> : vector<2x8x16xf32>
    %128 = tpu.matmul %127, %112, %cst_52 {dimension_numbers = #tpu.dot_dimension_numbers<[2], [1], [1], [2], [0, 0, 0, 1, 1, 2], [0], [0]>} : vector<2x8x8xf32>, vector<2x8x16xf32>, vector<2x8x16xf32> -> vector<2x8x16xf32>
    "tpu.trace_stop"() : () -> ()
    %129 = vector.shape_cast %128 : vector<2x8x16xf32> to vector<16x16xf32>
    %130 = vector.extract_strided_slice %99 {offsets = [0, 96], sizes = [16, 32], strides = [1, 1]} : vector<32x128xf32> to vector<16x32xf32>
    %cst_53 = arith.constant dense<0.000000e+00> : vector<16x32xf32>
    %131 = tpu.matmul %129, %130, %cst_53 {dimension_numbers = #tpu.dot_dimension_numbers<[1], [0], [0], [1], [0, 0, 1, 1], [], []>} : vector<16x16xf32>, vector<16x32xf32>, vector<16x32xf32> -> vector<16x32xf32>
    %132 = vector.extract_strided_slice %104 {offsets = [0, 16], sizes = [16, 16], strides = [1, 1]} : vector<16x32xf32> to vector<16x16xf32>
    %133 = vector.shape_cast %132 : vector<16x16xf32> to vector<2x8x16xf32>
    %134 = vector.extract_strided_slice %105 {offsets = [0, 16], sizes = [16, 16], strides = [1, 1]} : vector<16x32xf32> to vector<16x16xf32>
    %135 = vector.shape_cast %134 : vector<16x16xf32> to vector<2x8x16xf32>
    %136 = vector.extract_strided_slice %106 {offsets = [0, 16], sizes = [16, 16], strides = [1, 1]} : vector<16x32xf32> to vector<16x16xf32>
    %137 = vector.shape_cast %136 : vector<16x16xf32> to vector<2x8x16xf32>
    "tpu.trace_start"() <{level = 10 : i32, message = "bqd,bkd->bqk"}> : () -> ()
    %cst_54 = arith.constant dense<0.000000e+00> : vector<2x8x8xf32>
    %138 = tpu.matmul %133, %135, %cst_54 {dimension_numbers = #tpu.dot_dimension_numbers<[2], [2], [1], [1], [0, 0, 0, 1, 1, 1], [0], [0]>} : vector<2x8x16xf32>, vector<2x8x16xf32>, vector<2x8x8xf32> -> vector<2x8x8xf32>
    "tpu.trace_stop"() : () -> ()
    %cst_55 = arith.constant 2.500000e-01 : f32
    %139 = vector.broadcast %cst_55 : f32 to vector<2x8x8xf32>
    %140 = arith.mulf %138, %139 : vector<2x8x8xf32>
    %141 = vector.broadcast %97 : vector<2x1x8xf32> to vector<2x8x8xf32>
    %142 = arith.addf %140, %141 : vector<2x8x8xf32>
    %cst_56 = arith.constant dense<0xFF800000> : vector<2x8xf32>
    %143 = vector.multi_reduction <maximumf>, %142, %cst_56 [2] : vector<2x8x8xf32> to vector<2x8xf32>
    %144 = vector.shape_cast %143 : vector<2x8xf32> to vector<2x8x1xf32>
    %145 = vector.broadcast %144 : vector<2x8x1xf32> to vector<2x8x8xf32>
    %146 = arith.subf %142, %145 : vector<2x8x8xf32>
    %147 = math.exp %146 : vector<2x8x8xf32>
    %cst_57 = arith.constant dense<0.000000e+00> : vector<2x8xf32>
    %148 = vector.multi_reduction <add>, %147, %cst_57 [2] : vector<2x8x8xf32> to vector<2x8xf32>
    %149 = vector.shape_cast %148 : vector<2x8xf32> to vector<2x8x1xf32>
    %150 = tpu.reciprocal %149 {approx = true} : vector<2x8x1xf32> -> vector<2x8x1xf32>
    %151 = vector.broadcast %150 : vector<2x8x1xf32> to vector<2x8x8xf32>
    %152 = arith.mulf %147, %151 : vector<2x8x8xf32>
    "tpu.trace_start"() <{level = 10 : i32, message = "bqk,bkd->bqd"}> : () -> ()
    %cst_58 = arith.constant dense<0.000000e+00> : vector<2x8x16xf32>
    %153 = tpu.matmul %152, %137, %cst_58 {dimension_numbers = #tpu.dot_dimension_numbers<[2], [1], [1], [2], [0, 0, 0, 1, 1, 2], [0], [0]>} : vector<2x8x8xf32>, vector<2x8x16xf32>, vector<2x8x16xf32> -> vector<2x8x16xf32>
    "tpu.trace_stop"() : () -> ()
    %154 = vector.shape_cast %153 : vector<2x8x16xf32> to vector<16x16xf32>
    %155 = vector.extract_strided_slice %99 {offsets = [16, 96], sizes = [16, 32], strides = [1, 1]} : vector<32x128xf32> to vector<16x32xf32>
    %cst_59 = arith.constant dense<0.000000e+00> : vector<16x32xf32>
    %156 = tpu.matmul %154, %155, %cst_59 {dimension_numbers = #tpu.dot_dimension_numbers<[1], [0], [0], [1], [0, 0, 1, 1], [], []>} : vector<16x16xf32>, vector<16x32xf32>, vector<16x32xf32> -> vector<16x32xf32>
    %157 = arith.addf %131, %156 : vector<16x32xf32>
    %158 = vector.extract_strided_slice %0 {offsets = [3, 0], sizes = [1, 32], strides = [1, 1]} : vector<18x128xf32> to vector<1x32xf32>
    %159 = vector.broadcast %158 : vector<1x32xf32> to vector<16x32xf32>
    %160 = arith.addf %157, %159 : vector<16x32xf32>
    %161 = arith.addf %91, %160 : vector<16x32xf32>
    %162 = vector.extract_strided_slice %0 {offsets = [4, 0], sizes = [1, 32], strides = [1, 1]} : vector<18x128xf32> to vector<1x32xf32>
    %163 = vector.extract_strided_slice %0 {offsets = [5, 0], sizes = [1, 32], strides = [1, 1]} : vector<18x128xf32> to vector<1x32xf32>
    %cst_60 = arith.constant dense<0.000000e+00> : vector<16xf32>
    %164 = vector.multi_reduction <add>, %161, %cst_60 [1] : vector<16x32xf32> to vector<16xf32>
    %165 = vector.shape_cast %164 : vector<16xf32> to vector<16x1xf32>
    %cst_61 = arith.constant 3.200000e+01 : f32
    %166 = vector.broadcast %cst_61 : f32 to vector<16x1xf32>
    %167 = arith.divf %165, %166 : vector<16x1xf32>
    %168 = vector.broadcast %167 : vector<16x1xf32> to vector<16x32xf32>
    %169 = arith.subf %161, %168 : vector<16x32xf32>
    %170 = arith.mulf %169, %169 : vector<16x32xf32>
    %cst_62 = arith.constant dense<0.000000e+00> : vector<16xf32>
    %171 = vector.multi_reduction <add>, %170, %cst_62 [1] : vector<16x32xf32> to vector<16xf32>
    %172 = vector.shape_cast %171 : vector<16xf32> to vector<16x1xf32>
    %cst_63 = arith.constant 3.200000e+01 : f32
    %173 = vector.broadcast %cst_63 : f32 to vector<16x1xf32>
    %174 = arith.divf %172, %173 : vector<16x1xf32>
    %175 = vector.broadcast %167 : vector<16x1xf32> to vector<16x32xf32>
    %176 = arith.subf %161, %175 : vector<16x32xf32>
    %cst_64 = arith.constant 9.99999996E-13 : f32
    %177 = vector.broadcast %cst_64 : f32 to vector<16x1xf32>
    %178 = arith.addf %174, %177 : vector<16x1xf32>
    %179 = math.rsqrt %178 : vector<16x1xf32>
    %180 = vector.broadcast %179 : vector<16x1xf32> to vector<16x32xf32>
    %181 = arith.mulf %176, %180 : vector<16x32xf32>
    %182 = vector.broadcast %162 : vector<1x32xf32> to vector<16x32xf32>
    %183 = arith.mulf %181, %182 : vector<16x32xf32>
    %184 = vector.broadcast %163 : vector<1x32xf32> to vector<16x32xf32>
    %185 = arith.addf %183, %184 : vector<16x32xf32>
    %c0_65 = arith.constant 0 : index
    %c0_66 = arith.constant 0 : index
    %c0_67 = arith.constant 0 : index
    %186 = vector.load %arg5[%c0_65, %c0_66, %c0_67] : memref<2x32x64xf32, #tpu.memory_space<vmem>>, vector<1x32x64xf32>
    %187 = vector.shape_cast %186 : vector<1x32x64xf32> to vector<32x64xf32>
    %cst_68 = arith.constant dense<0.000000e+00> : vector<16x64xf32>
    %188 = tpu.matmul %185, %187, %cst_68 {dimension_numbers = #tpu.dot_dimension_numbers<[1], [0], [0], [1], [0, 0, 1, 1], [], []>} : vector<16x32xf32>, vector<32x64xf32>, vector<16x64xf32> -> vector<16x64xf32>
    %189 = vector.extract_strided_slice %0 {offsets = [6, 0], sizes = [1, 64], strides = [1, 1]} : vector<18x128xf32> to vector<1x64xf32>
    %190 = vector.broadcast %189 : vector<1x64xf32> to vector<16x64xf32>
    %191 = arith.addf %188, %190 : vector<16x64xf32>
    %192 = arith.mulf %191, %191 : vector<16x64xf32>
    %193 = arith.mulf %191, %192 : vector<16x64xf32>
    %cst_69 = arith.constant 4.471500e-02 : f32
    %194 = vector.broadcast %cst_69 : f32 to vector<16x64xf32>
    %195 = arith.mulf %194, %193 : vector<16x64xf32>
    %196 = arith.addf %191, %195 : vector<16x64xf32>
    %cst_70 = arith.constant 0.797884583 : f32
    %197 = vector.broadcast %cst_70 : f32 to vector<16x64xf32>
    %198 = arith.mulf %197, %196 : vector<16x64xf32>
    %199 = math.tanh %198 : vector<16x64xf32>
    %cst_71 = arith.constant 1.000000e+00 : f32
    %200 = vector.broadcast %cst_71 : f32 to vector<16x64xf32>
    %201 = arith.addf %200, %199 : vector<16x64xf32>
    %cst_72 = arith.constant 5.000000e-01 : f32
    %202 = vector.broadcast %cst_72 : f32 to vector<16x64xf32>
    %203 = arith.mulf %202, %201 : vector<16x64xf32>
    %204 = arith.mulf %191, %203 : vector<16x64xf32>
    %c0_73 = arith.constant 0 : index
    %c0_74 = arith.constant 0 : index
    %c0_75 = arith.constant 0 : index
    %205 = vector.load %arg6[%c0_73, %c0_74, %c0_75] : memref<2x64x32xf32, #tpu.memory_space<vmem>>, vector<1x64x32xf32>
    %206 = vector.shape_cast %205 : vector<1x64x32xf32> to vector<64x32xf32>
    %cst_76 = arith.constant dense<0.000000e+00> : vector<16x32xf32>
    %207 = tpu.matmul %204, %206, %cst_76 {dimension_numbers = #tpu.dot_dimension_numbers<[1], [0], [0], [1], [0, 0, 1, 1], [], []>} : vector<16x64xf32>, vector<64x32xf32>, vector<16x32xf32> -> vector<16x32xf32>
    %208 = vector.extract_strided_slice %0 {offsets = [7, 0], sizes = [1, 32], strides = [1, 1]} : vector<18x128xf32> to vector<1x32xf32>
    %209 = vector.broadcast %208 : vector<1x32xf32> to vector<16x32xf32>
    %210 = arith.addf %207, %209 : vector<16x32xf32>
    %211 = arith.addf %185, %210 : vector<16x32xf32>
    %212 = vector.extract_strided_slice %0 {offsets = [8, 0], sizes = [1, 32], strides = [1, 1]} : vector<18x128xf32> to vector<1x32xf32>
    %213 = vector.extract_strided_slice %0 {offsets = [9, 0], sizes = [1, 32], strides = [1, 1]} : vector<18x128xf32> to vector<1x32xf32>
    %cst_77 = arith.constant dense<0.000000e+00> : vector<16xf32>
    %214 = vector.multi_reduction <add>, %211, %cst_77 [1] : vector<16x32xf32> to vector<16xf32>
    %215 = vector.shape_cast %214 : vector<16xf32> to vector<16x1xf32>
    %cst_78 = arith.constant 3.200000e+01 : f32
    %216 = vector.broadcast %cst_78 : f32 to vector<16x1xf32>
    %217 = arith.divf %215, %216 : vector<16x1xf32>
    %218 = vector.broadcast %217 : vector<16x1xf32> to vector<16x32xf32>
    %219 = arith.subf %211, %218 : vector<16x32xf32>
    %220 = arith.mulf %219, %219 : vector<16x32xf32>
    %cst_79 = arith.constant dense<0.000000e+00> : vector<16xf32>
    %221 = vector.multi_reduction <add>, %220, %cst_79 [1] : vector<16x32xf32> to vector<16xf32>
    %222 = vector.shape_cast %221 : vector<16xf32> to vector<16x1xf32>
    %cst_80 = arith.constant 3.200000e+01 : f32
    %223 = vector.broadcast %cst_80 : f32 to vector<16x1xf32>
    %224 = arith.divf %222, %223 : vector<16x1xf32>
    %225 = vector.broadcast %217 : vector<16x1xf32> to vector<16x32xf32>
    %226 = arith.subf %211, %225 : vector<16x32xf32>
    %cst_81 = arith.constant 9.99999996E-13 : f32
    %227 = vector.broadcast %cst_81 : f32 to vector<16x1xf32>
    %228 = arith.addf %224, %227 : vector<16x1xf32>
    %229 = math.rsqrt %228 : vector<16x1xf32>
    %230 = vector.broadcast %229 : vector<16x1xf32> to vector<16x32xf32>
    %231 = arith.mulf %226, %230 : vector<16x32xf32>
    %232 = vector.broadcast %212 : vector<1x32xf32> to vector<16x32xf32>
    %233 = arith.mulf %231, %232 : vector<16x32xf32>
    %234 = vector.broadcast %213 : vector<1x32xf32> to vector<16x32xf32>
    %235 = arith.addf %233, %234 : vector<16x32xf32>
    %c1_82 = arith.constant 1 : index
    %c0_83 = arith.constant 0 : index
    %c0_84 = arith.constant 0 : index
    %236 = vector.load %arg4[%c1_82, %c0_83, %c0_84] : memref<2x32x128xf32, #tpu.memory_space<vmem>>, vector<1x32x128xf32>
    %237 = vector.shape_cast %236 : vector<1x32x128xf32> to vector<32x128xf32>
    %cst_85 = arith.constant dense<0.000000e+00> : vector<16x128xf32>
    %238 = tpu.matmul %235, %237, %cst_85 {dimension_numbers = #tpu.dot_dimension_numbers<[1], [0], [0], [1], [0, 0, 1, 1], [], []>} : vector<16x32xf32>, vector<32x128xf32>, vector<16x128xf32> -> vector<16x128xf32>
    %239 = vector.extract_strided_slice %0 {offsets = [10, 0], sizes = [1, 128], strides = [1, 1]} : vector<18x128xf32> to vector<1x128xf32>
    %240 = vector.broadcast %239 : vector<1x128xf32> to vector<16x128xf32>
    %241 = arith.addf %238, %240 : vector<16x128xf32>
    %242 = vector.extract_strided_slice %241 {offsets = [0, 0], sizes = [16, 32], strides = [1, 1]} : vector<16x128xf32> to vector<16x32xf32>
    %243 = vector.extract_strided_slice %241 {offsets = [0, 32], sizes = [16, 32], strides = [1, 1]} : vector<16x128xf32> to vector<16x32xf32>
    %244 = vector.extract_strided_slice %241 {offsets = [0, 64], sizes = [16, 32], strides = [1, 1]} : vector<16x128xf32> to vector<16x32xf32>
    %245 = vector.extract_strided_slice %242 {offsets = [0, 0], sizes = [16, 16], strides = [1, 1]} : vector<16x32xf32> to vector<16x16xf32>
    %246 = vector.shape_cast %245 : vector<16x16xf32> to vector<2x8x16xf32>
    %247 = vector.extract_strided_slice %243 {offsets = [0, 0], sizes = [16, 16], strides = [1, 1]} : vector<16x32xf32> to vector<16x16xf32>
    %248 = vector.shape_cast %247 : vector<16x16xf32> to vector<2x8x16xf32>
    %249 = vector.extract_strided_slice %244 {offsets = [0, 0], sizes = [16, 16], strides = [1, 1]} : vector<16x32xf32> to vector<16x16xf32>
    %250 = vector.shape_cast %249 : vector<16x16xf32> to vector<2x8x16xf32>
    "tpu.trace_start"() <{level = 10 : i32, message = "bqd,bkd->bqk"}> : () -> ()
    %cst_86 = arith.constant dense<0.000000e+00> : vector<2x8x8xf32>
    %251 = tpu.matmul %246, %248, %cst_86 {dimension_numbers = #tpu.dot_dimension_numbers<[2], [2], [1], [1], [0, 0, 0, 1, 1, 1], [0], [0]>} : vector<2x8x16xf32>, vector<2x8x16xf32>, vector<2x8x8xf32> -> vector<2x8x8xf32>
    "tpu.trace_stop"() : () -> ()
    %cst_87 = arith.constant 2.500000e-01 : f32
    %252 = vector.broadcast %cst_87 : f32 to vector<2x8x8xf32>
    %253 = arith.mulf %251, %252 : vector<2x8x8xf32>
    %254 = vector.broadcast %97 : vector<2x1x8xf32> to vector<2x8x8xf32>
    %255 = arith.addf %253, %254 : vector<2x8x8xf32>
    %cst_88 = arith.constant dense<0xFF800000> : vector<2x8xf32>
    %256 = vector.multi_reduction <maximumf>, %255, %cst_88 [2] : vector<2x8x8xf32> to vector<2x8xf32>
    %257 = vector.shape_cast %256 : vector<2x8xf32> to vector<2x8x1xf32>
    %258 = vector.broadcast %257 : vector<2x8x1xf32> to vector<2x8x8xf32>
    %259 = arith.subf %255, %258 : vector<2x8x8xf32>
    %260 = math.exp %259 : vector<2x8x8xf32>
    %cst_89 = arith.constant dense<0.000000e+00> : vector<2x8xf32>
    %261 = vector.multi_reduction <add>, %260, %cst_89 [2] : vector<2x8x8xf32> to vector<2x8xf32>
    %262 = vector.shape_cast %261 : vector<2x8xf32> to vector<2x8x1xf32>
    %263 = tpu.reciprocal %262 {approx = true} : vector<2x8x1xf32> -> vector<2x8x1xf32>
    %264 = vector.broadcast %263 : vector<2x8x1xf32> to vector<2x8x8xf32>
    %265 = arith.mulf %260, %264 : vector<2x8x8xf32>
    "tpu.trace_start"() <{level = 10 : i32, message = "bqk,bkd->bqd"}> : () -> ()
    %cst_90 = arith.constant dense<0.000000e+00> : vector<2x8x16xf32>
    %266 = tpu.matmul %265, %250, %cst_90 {dimension_numbers = #tpu.dot_dimension_numbers<[2], [1], [1], [2], [0, 0, 0, 1, 1, 2], [0], [0]>} : vector<2x8x8xf32>, vector<2x8x16xf32>, vector<2x8x16xf32> -> vector<2x8x16xf32>
    "tpu.trace_stop"() : () -> ()
    %267 = vector.shape_cast %266 : vector<2x8x16xf32> to vector<16x16xf32>
    %268 = vector.extract_strided_slice %237 {offsets = [0, 96], sizes = [16, 32], strides = [1, 1]} : vector<32x128xf32> to vector<16x32xf32>
    %cst_91 = arith.constant dense<0.000000e+00> : vector<16x32xf32>
    %269 = tpu.matmul %267, %268, %cst_91 {dimension_numbers = #tpu.dot_dimension_numbers<[1], [0], [0], [1], [0, 0, 1, 1], [], []>} : vector<16x16xf32>, vector<16x32xf32>, vector<16x32xf32> -> vector<16x32xf32>
    %270 = vector.extract_strided_slice %242 {offsets = [0, 16], sizes = [16, 16], strides = [1, 1]} : vector<16x32xf32> to vector<16x16xf32>
    %271 = vector.shape_cast %270 : vector<16x16xf32> to vector<2x8x16xf32>
    %272 = vector.extract_strided_slice %243 {offsets = [0, 16], sizes = [16, 16], strides = [1, 1]} : vector<16x32xf32> to vector<16x16xf32>
    %273 = vector.shape_cast %272 : vector<16x16xf32> to vector<2x8x16xf32>
    %274 = vector.extract_strided_slice %244 {offsets = [0, 16], sizes = [16, 16], strides = [1, 1]} : vector<16x32xf32> to vector<16x16xf32>
    %275 = vector.shape_cast %274 : vector<16x16xf32> to vector<2x8x16xf32>
    "tpu.trace_start"() <{level = 10 : i32, message = "bqd,bkd->bqk"}> : () -> ()
    %cst_92 = arith.constant dense<0.000000e+00> : vector<2x8x8xf32>
    %276 = tpu.matmul %271, %273, %cst_92 {dimension_numbers = #tpu.dot_dimension_numbers<[2], [2], [1], [1], [0, 0, 0, 1, 1, 1], [0], [0]>} : vector<2x8x16xf32>, vector<2x8x16xf32>, vector<2x8x8xf32> -> vector<2x8x8xf32>
    "tpu.trace_stop"() : () -> ()
    %cst_93 = arith.constant 2.500000e-01 : f32
    %277 = vector.broadcast %cst_93 : f32 to vector<2x8x8xf32>
    %278 = arith.mulf %276, %277 : vector<2x8x8xf32>
    %279 = vector.broadcast %97 : vector<2x1x8xf32> to vector<2x8x8xf32>
    %280 = arith.addf %278, %279 : vector<2x8x8xf32>
    %cst_94 = arith.constant dense<0xFF800000> : vector<2x8xf32>
    %281 = vector.multi_reduction <maximumf>, %280, %cst_94 [2] : vector<2x8x8xf32> to vector<2x8xf32>
    %282 = vector.shape_cast %281 : vector<2x8xf32> to vector<2x8x1xf32>
    %283 = vector.broadcast %282 : vector<2x8x1xf32> to vector<2x8x8xf32>
    %284 = arith.subf %280, %283 : vector<2x8x8xf32>
    %285 = math.exp %284 : vector<2x8x8xf32>
    %cst_95 = arith.constant dense<0.000000e+00> : vector<2x8xf32>
    %286 = vector.multi_reduction <add>, %285, %cst_95 [2] : vector<2x8x8xf32> to vector<2x8xf32>
    %287 = vector.shape_cast %286 : vector<2x8xf32> to vector<2x8x1xf32>
    %288 = tpu.reciprocal %287 {approx = true} : vector<2x8x1xf32> -> vector<2x8x1xf32>
    %289 = vector.broadcast %288 : vector<2x8x1xf32> to vector<2x8x8xf32>
    %290 = arith.mulf %285, %289 : vector<2x8x8xf32>
    "tpu.trace_start"() <{level = 10 : i32, message = "bqk,bkd->bqd"}> : () -> ()
    %cst_96 = arith.constant dense<0.000000e+00> : vector<2x8x16xf32>
    %291 = tpu.matmul %290, %275, %cst_96 {dimension_numbers = #tpu.dot_dimension_numbers<[2], [1], [1], [2], [0, 0, 0, 1, 1, 2], [0], [0]>} : vector<2x8x8xf32>, vector<2x8x16xf32>, vector<2x8x16xf32> -> vector<2x8x16xf32>
    "tpu.trace_stop"() : () -> ()
    %292 = vector.shape_cast %291 : vector<2x8x16xf32> to vector<16x16xf32>
    %293 = vector.extract_strided_slice %237 {offsets = [16, 96], sizes = [16, 32], strides = [1, 1]} : vector<32x128xf32> to vector<16x32xf32>
    %cst_97 = arith.constant dense<0.000000e+00> : vector<16x32xf32>
    %294 = tpu.matmul %292, %293, %cst_97 {dimension_numbers = #tpu.dot_dimension_numbers<[1], [0], [0], [1], [0, 0, 1, 1], [], []>} : vector<16x16xf32>, vector<16x32xf32>, vector<16x32xf32> -> vector<16x32xf32>
    %295 = arith.addf %269, %294 : vector<16x32xf32>
    %296 = vector.extract_strided_slice %0 {offsets = [11, 0], sizes = [1, 32], strides = [1, 1]} : vector<18x128xf32> to vector<1x32xf32>
    %297 = vector.broadcast %296 : vector<1x32xf32> to vector<16x32xf32>
    %298 = arith.addf %295, %297 : vector<16x32xf32>
    %299 = arith.addf %235, %298 : vector<16x32xf32>
    %300 = vector.extract_strided_slice %0 {offsets = [12, 0], sizes = [1, 32], strides = [1, 1]} : vector<18x128xf32> to vector<1x32xf32>
    %301 = vector.extract_strided_slice %0 {offsets = [13, 0], sizes = [1, 32], strides = [1, 1]} : vector<18x128xf32> to vector<1x32xf32>
    %cst_98 = arith.constant dense<0.000000e+00> : vector<16xf32>
    %302 = vector.multi_reduction <add>, %299, %cst_98 [1] : vector<16x32xf32> to vector<16xf32>
    %303 = vector.shape_cast %302 : vector<16xf32> to vector<16x1xf32>
    %cst_99 = arith.constant 3.200000e+01 : f32
    %304 = vector.broadcast %cst_99 : f32 to vector<16x1xf32>
    %305 = arith.divf %303, %304 : vector<16x1xf32>
    %306 = vector.broadcast %305 : vector<16x1xf32> to vector<16x32xf32>
    %307 = arith.subf %299, %306 : vector<16x32xf32>
    %308 = arith.mulf %307, %307 : vector<16x32xf32>
    %cst_100 = arith.constant dense<0.000000e+00> : vector<16xf32>
    %309 = vector.multi_reduction <add>, %308, %cst_100 [1] : vector<16x32xf32> to vector<16xf32>
    %310 = vector.shape_cast %309 : vector<16xf32> to vector<16x1xf32>
    %cst_101 = arith.constant 3.200000e+01 : f32
    %311 = vector.broadcast %cst_101 : f32 to vector<16x1xf32>
    %312 = arith.divf %310, %311 : vector<16x1xf32>
    %313 = vector.broadcast %305 : vector<16x1xf32> to vector<16x32xf32>
    %314 = arith.subf %299, %313 : vector<16x32xf32>
    %cst_102 = arith.constant 9.99999996E-13 : f32
    %315 = vector.broadcast %cst_102 : f32 to vector<16x1xf32>
    %316 = arith.addf %312, %315 : vector<16x1xf32>
    %317 = math.rsqrt %316 : vector<16x1xf32>
    %318 = vector.broadcast %317 : vector<16x1xf32> to vector<16x32xf32>
    %319 = arith.mulf %314, %318 : vector<16x32xf32>
    %320 = vector.broadcast %300 : vector<1x32xf32> to vector<16x32xf32>
    %321 = arith.mulf %319, %320 : vector<16x32xf32>
    %322 = vector.broadcast %301 : vector<1x32xf32> to vector<16x32xf32>
    %323 = arith.addf %321, %322 : vector<16x32xf32>
    %c1_103 = arith.constant 1 : index
    %c0_104 = arith.constant 0 : index
    %c0_105 = arith.constant 0 : index
    %324 = vector.load %arg5[%c1_103, %c0_104, %c0_105] : memref<2x32x64xf32, #tpu.memory_space<vmem>>, vector<1x32x64xf32>
    %325 = vector.shape_cast %324 : vector<1x32x64xf32> to vector<32x64xf32>
    %cst_106 = arith.constant dense<0.000000e+00> : vector<16x64xf32>
    %326 = tpu.matmul %323, %325, %cst_106 {dimension_numbers = #tpu.dot_dimension_numbers<[1], [0], [0], [1], [0, 0, 1, 1], [], []>} : vector<16x32xf32>, vector<32x64xf32>, vector<16x64xf32> -> vector<16x64xf32>
    %327 = vector.extract_strided_slice %0 {offsets = [14, 0], sizes = [1, 64], strides = [1, 1]} : vector<18x128xf32> to vector<1x64xf32>
    %328 = vector.broadcast %327 : vector<1x64xf32> to vector<16x64xf32>
    %329 = arith.addf %326, %328 : vector<16x64xf32>
    %330 = arith.mulf %329, %329 : vector<16x64xf32>
    %331 = arith.mulf %329, %330 : vector<16x64xf32>
    %cst_107 = arith.constant 4.471500e-02 : f32
    %332 = vector.broadcast %cst_107 : f32 to vector<16x64xf32>
    %333 = arith.mulf %332, %331 : vector<16x64xf32>
    %334 = arith.addf %329, %333 : vector<16x64xf32>
    %cst_108 = arith.constant 0.797884583 : f32
    %335 = vector.broadcast %cst_108 : f32 to vector<16x64xf32>
    %336 = arith.mulf %335, %334 : vector<16x64xf32>
    %337 = math.tanh %336 : vector<16x64xf32>
    %cst_109 = arith.constant 1.000000e+00 : f32
    %338 = vector.broadcast %cst_109 : f32 to vector<16x64xf32>
    %339 = arith.addf %338, %337 : vector<16x64xf32>
    %cst_110 = arith.constant 5.000000e-01 : f32
    %340 = vector.broadcast %cst_110 : f32 to vector<16x64xf32>
    %341 = arith.mulf %340, %339 : vector<16x64xf32>
    %342 = arith.mulf %329, %341 : vector<16x64xf32>
    %c1_111 = arith.constant 1 : index
    %c0_112 = arith.constant 0 : index
    %c0_113 = arith.constant 0 : index
    %343 = vector.load %arg6[%c1_111, %c0_112, %c0_113] : memref<2x64x32xf32, #tpu.memory_space<vmem>>, vector<1x64x32xf32>
    %344 = vector.shape_cast %343 : vector<1x64x32xf32> to vector<64x32xf32>
    %cst_114 = arith.constant dense<0.000000e+00> : vector<16x32xf32>
    %345 = tpu.matmul %342, %344, %cst_114 {dimension_numbers = #tpu.dot_dimension_numbers<[1], [0], [0], [1], [0, 0, 1, 1], [], []>} : vector<16x64xf32>, vector<64x32xf32>, vector<16x32xf32> -> vector<16x32xf32>
    %346 = vector.extract_strided_slice %0 {offsets = [15, 0], sizes = [1, 32], strides = [1, 1]} : vector<18x128xf32> to vector<1x32xf32>
    %347 = vector.broadcast %346 : vector<1x32xf32> to vector<16x32xf32>
    %348 = arith.addf %345, %347 : vector<16x32xf32>
    %349 = arith.addf %323, %348 : vector<16x32xf32>
    %350 = vector.extract_strided_slice %0 {offsets = [16, 0], sizes = [1, 32], strides = [1, 1]} : vector<18x128xf32> to vector<1x32xf32>
    %351 = vector.extract_strided_slice %0 {offsets = [17, 0], sizes = [1, 32], strides = [1, 1]} : vector<18x128xf32> to vector<1x32xf32>
    %cst_115 = arith.constant dense<0.000000e+00> : vector<16xf32>
    %352 = vector.multi_reduction <add>, %349, %cst_115 [1] : vector<16x32xf32> to vector<16xf32>
    %353 = vector.shape_cast %352 : vector<16xf32> to vector<16x1xf32>
    %cst_116 = arith.constant 3.200000e+01 : f32
    %354 = vector.broadcast %cst_116 : f32 to vector<16x1xf32>
    %355 = arith.divf %353, %354 : vector<16x1xf32>
    %356 = vector.broadcast %355 : vector<16x1xf32> to vector<16x32xf32>
    %357 = arith.subf %349, %356 : vector<16x32xf32>
    %358 = arith.mulf %357, %357 : vector<16x32xf32>
    %cst_117 = arith.constant dense<0.000000e+00> : vector<16xf32>
    %359 = vector.multi_reduction <add>, %358, %cst_117 [1] : vector<16x32xf32> to vector<16xf32>
    %360 = vector.shape_cast %359 : vector<16xf32> to vector<16x1xf32>
    %cst_118 = arith.constant 3.200000e+01 : f32
    %361 = vector.broadcast %cst_118 : f32 to vector<16x1xf32>
    %362 = arith.divf %360, %361 : vector<16x1xf32>
    %363 = vector.broadcast %355 : vector<16x1xf32> to vector<16x32xf32>
    %364 = arith.subf %349, %363 : vector<16x32xf32>
    %cst_119 = arith.constant 9.99999996E-13 : f32
    %365 = vector.broadcast %cst_119 : f32 to vector<16x1xf32>
    %366 = arith.addf %362, %365 : vector<16x1xf32>
    %367 = math.rsqrt %366 : vector<16x1xf32>
    %368 = vector.broadcast %367 : vector<16x1xf32> to vector<16x32xf32>
    %369 = arith.mulf %364, %368 : vector<16x32xf32>
    %370 = vector.broadcast %350 : vector<1x32xf32> to vector<16x32xf32>
    %371 = arith.mulf %369, %370 : vector<16x32xf32>
    %372 = vector.broadcast %351 : vector<1x32xf32> to vector<16x32xf32>
    %373 = arith.addf %371, %372 : vector<16x32xf32>
    %374 = tpu.iota {dimensions = array<i32: 0>} : vector<2x16xi32>
    %375 = tpu.iota {dimensions = array<i32: 1>} : vector<2x16xi32>
    %c8_i32 = arith.constant 8 : i32
    %376 = vector.broadcast %c8_i32 : i32 to vector<2x16xi32>
    %377 = arith.muli %374, %376 : vector<2x16xi32>
    %378 = arith.cmpi sge, %375, %377 : vector<2x16xi32>
    %c1_i32 = arith.constant 1 : i32
    %379 = vector.broadcast %c1_i32 : i32 to vector<2x16xi32>
    %380 = arith.addi %374, %379 : vector<2x16xi32>
    %c8_i32_120 = arith.constant 8 : i32
    %381 = vector.broadcast %c8_i32_120 : i32 to vector<2x16xi32>
    %382 = arith.muli %380, %381 : vector<2x16xi32>
    %383 = arith.cmpi slt, %375, %382 : vector<2x16xi32>
    %384 = arith.andi %378, %383 : vector<2x16xi1>
    %385 = tpu.concatenate %92, %92 in 1 : vector<2x8xf32>, vector<2x8xf32> -> vector<2x16xf32>
    %cst_121 = arith.constant 0.000000e+00 : f32
    %386 = vector.broadcast %cst_121 : f32 to vector<2x16xf32>
    %387 = arith.select %384, %385, %386 : vector<2x16xi1>, vector<2x16xf32>
    %cst_122 = arith.constant dense<0.000000e+00> : vector<2x32xf32>
    %388 = tpu.matmul %387, %373, %cst_122 {dimension_numbers = #tpu.dot_dimension_numbers<[1], [0], [0], [1], [0, 0, 1, 1], [], []>} : vector<2x16xf32>, vector<16x32xf32>, vector<2x32xf32> -> vector<2x32xf32>
    %cst_123 = arith.constant dense<0.000000e+00> : vector<2xf32>
    %389 = vector.multi_reduction <add>, %387, %cst_123 [1] : vector<2x16xf32> to vector<2xf32>
    %390 = vector.shape_cast %389 : vector<2xf32> to vector<2x1xf32>
    %cst_124 = arith.constant 9.99999971E-10 : f32
    %391 = vector.broadcast %cst_124 : f32 to vector<2x1xf32>
    %392 = arith.maximumf %390, %391 : vector<2x1xf32>
    %393 = tpu.reciprocal %392 {approx = true} : vector<2x1xf32> -> vector<2x1xf32>
    %394 = vector.broadcast %393 : vector<2x1xf32> to vector<2x32xf32>
    %395 = arith.mulf %388, %394 : vector<2x32xf32>
    %c0_125 = arith.constant 0 : index
    %c0_126 = arith.constant 0 : index
    %396 = vector.load %arg8[%c0_125, %c0_126] : memref<2x32xf32, #tpu.memory_space<vmem>>, vector<2x32xf32>
    tpu.vector_store %arg8[%c0_125, %c0_126], %395 {strides = array<i32>} : memref<2x32xf32, #tpu.memory_space<vmem>>, vector<2x32xf32>,
    return
  }
}

</mosaic_0001>

<bundles_post_ra>
// kernel: run_fused_forward.1
= control target key start
LH: loop header
LB: loop body
LE: loop exit
PB: predicated region body
PF: predicated region fallthrough
CT: control target
= control target key end

     0   :  { %s4057_s0 = inlined_call_operand.vmem [shape: s32[16], index: 0, kind: input, shape index: {}]   ;;  %s4058_s1 = inlined_call_operand.vmem [shape: f32[2,8], index: 1, kind: input, shape index: {}]   ;;  %s4059_s2 = inlined_call_operand.vmem [shape: f32[100,1,32], index: 2, kind: input, shape index: {}]   ;;  %s4060_s3 = inlined_call_operand.vmem [shape: f32[16,32], index: 3, kind: input, shape index: {}]   ;;  %s4061_s4 = inlined_call_operand.vmem [shape: f32[2,32,128], index: 4, kind: input, shape index: {}]   ;;  %s4062_s5 = inlined_call_operand.vmem [shape: f32[2,32,64], index: 5, kind: input, shape index: {}]   ;;  %s4063_s6 = inlined_call_operand.vmem [shape: f32[2,64,32], index: 6, kind: input, shape index: {}]   ;;  %s4064_s7 = inlined_call_operand.vmem [shape: f32[18,128], index: 7, kind: input, shape index: {}]   ;;  %s4065_s8 = inlined_call_operand.hbm [shape: f32[2,32], index: 8, kind: output, shape index: {}]  }
   0x1   :  { %4067 = sst [smem:[#allocation8_spill]] %s4065_s8 }
   0x2   :  { %13 = vsyncpa [#allocation4], 0 }
   0x3   :  { %14 = vsyncpa [#allocation3], 0  ;;  %s21_s29 = sshll.u32 %s4057_s0, 4  ;;  %s22_s29 = int_to_ptr.vmem [resolvable:$true] %s21_s29 }
   0x4   :  { %s3417_s30 = scalar_lea.vmem %s22_s29, 16  ;;  %p3422_p1 = scmp.lt.s32.totalorder %s22_s29, %s22_s29 }
   0x5   :  { %p3418_p0 = scmp.ne.s32.totalorder %s22_s29, %s3417_s30  ;;  %p3423_p2 = scmp.lt.s32.totalorder %s3417_s30, %s3417_s30 }
   0x7   :  { %p3424_p3 = por %p3423_p2, %p3422_p1 }
   0x9   :  { %p3425_p4 = pnand %p3424_p3, %p3418_p0 }
   0xb   :  { %3428 = shalt.err (!%p3425_p4)
}
   0xc   :  { %s3455_s9 = smov [#allocation2]  }
   0xd   :  { %24 = dma.vmem_to_smem %s22_s29, 16, %s3455_s9, [#allocation4]  }
   0xe   :  { %3451 = dma.done.wait [#allocation4], 16  }
   0xf   :  { %3452 = vsyncadd [#allocation4], 4294967280 }
  0x10   :  { %42 = sfence }
  0x11   :  { %s46_s10 = sld [smem:[#allocation2]]  ;;  %s2852_s11 = sld [smem:[#allocation2 + $0x1]]  ;;  %vm178_vm0 = vcmask 1040384   ;;  %vm180_vm1 = vcmask 1041408   ;;  %vm182_vm2 = vcmask 1042432   ;;  %vm184_vm3 = vcmask 1043456  }
  0x12   :  { %s2853_s12 = sld [smem:[#allocation2 + $0x2]]  ;;  %s2854_s13 = sld [smem:[#allocation2 + $0x3]]  ;;  %vm186_vm4 = vcmask 1044480   ;;  %vm188_vm5 = vcmask 1045504   ;;  %vm190_vm6 = vcmask 1046528   ;;  %v199_v15 = vld [vmem:[%s4060_s3] sm:$0xff]  ;;  %v231_v55 = vlaneseq }
  0x13   :  { %s2855_s14 = sld [smem:[#allocation2 + $0x4]]  ;;  %s2856_s15 = sld [smem:[#allocation2 + $0x5]]  ;;  %vm203_vm7 = vcmask 261120   ;;  %v200_v31 = vld [vmem:[%s4060_s3 + $0x8] sm:$0xff]  ;;  %v3606_v46 = vld [vmem:[%s4061_s4] sm:$0xff]  ;;  %v3616_v48 = vld [vmem:[%s4061_s4 + $0x10] sm:$0xff] }
  0x14   :  { %s2857_s0 = sld [smem:[#allocation2 + $0x6]]  ;;  %s3516_s16 = sld [smem:[#allocation2 + $0x7]]  ;;  %v3611_v47 = vld [vmem:[%s4061_s4 + $0x8] sm:$0xff]  ;;  %v3625_v51 = vld [vmem:[%s4061_s4 + $0x18] sm:$0xff]  ;;  %v3630_v57 = vshrl.u32 %v231_v55, 7  ;;  %v3638_v61 = vld [vmem:[%s4064_s7] sm:$0xff] }
  0x15   :  { %s3518_s17 = sld [smem:[#allocation2 + $0x8]]  ;;  %s3520_s18 = sld [smem:[#allocation2 + $0x9]]  ;;  %v3339_v49 = vpack.i.bf16 %v3611_v47, %v3606_v46  ;;  %v3234_v50 = vpack.c.bf16 %v3611_v47, %v3606_v46  ;;  %v3238_v52 = vpack.c.bf16 %v3625_v51, %v3616_v48  ;;  %vm3457_vm8 = vmmov 0  }
  0x16   :  { %s3522_s19 = sld [smem:[#allocation2 + $0xa]]  ;;  %s3524_s20 = sld [smem:[#allocation2 + $0xb]]  ;;  %v3633_v60 = vsub.s32 0, %v3630_v57  ;;  %v3641_v63 = vsub.s32 1, %v3630_v57  ;;  %vm361_vm9 = vcmask 130048   ;;  %vm527_vm10 = vcmask 64512  }
  0x17   :  { %s47_s23 = scalar_lea.vmem %s4059_s2, %s46_s10  ;;  %s50_s26 = scalar_lea.vmem %s4059_s2, %s2852_s11  ;;  %3235 = vmatprep.subr.bf16.mxu1 %v3234_v50  ;;  %vm1379_vm11 = vcmask 523264   ;;  %vm2812_vm15 = vcmask 123904  }
  0x18   :  { %v48_v0 = vld [vmem:[%s47_s23] sm:$0x1]  ;;  %s53_s29 = scalar_lea.vmem %s4059_s2, %s2853_s12  ;;  %s56_s8 = scalar_lea.vmem %s4059_s2, %s2854_s13  ;;  %3237 = vmatpush3.bf16.msra.mxu1 %v3234_v50 }
  0x19   :  { %v2867_v1 = vld [vmem:[%s50_s26] ss:$0 sm:$0xff]  ;;  %s59_s11 = scalar_lea.vmem %s4059_s2, %s2855_s14  ;;  %s62_s24 = scalar_lea.vmem %s4059_s2, %s2856_s15  ;;  %3239 = vmatprep.subr.bf16.mxu1 %v3238_v52 }
  0x1a   :  { %v2868_v2 = vld [vmem:[%s53_s29] ss:$0 sm:$0xff]  ;;  %v179_v4 = vsel %vm178_vm0, %v48_v0, %v2867_v1  ;;  %s68_s27 = scalar_lea.vmem %s4059_s2, %s3516_s16  ;;  %s2865_s12 = sld [smem:[#allocation2 + $0xe]]  ;;  %v234_v0 = vrot.slane %v3638_v61, %v3633_v60 }
  0x1b   :  { %v2869_v3 = vld [vmem:[%s56_s8] ss:$0 sm:$0xff]  ;;  %s65_s8 = scalar_lea.vmem %s4059_s2, %s2857_s0  ;;  %v181_v7 = vsel %vm180_vm1, %v179_v4, %v2868_v2  ;;  %s71_s28 = scalar_lea.vmem %s4059_s2, %s3518_s17 }
  0x1c   :  { %v2870_v5 = vld [vmem:[%s59_s11] ss:$0 sm:$0xff]  ;;  %v183_v9 = vsel %vm182_vm2, %v181_v7, %v2869_v3  ;;  %s74_s0 = scalar_lea.vmem %s4059_s2, %s3520_s18  ;;  %s77_s10 = scalar_lea.vmem %s4059_s2, %s3522_s19  ;;  %3241 = vmatpush3.bf16.msra.mxu1 %v3238_v52  ;;  %v240_v3 = vrot.slane %v3638_v61, %v3641_v63 }
  0x1d   :  { %v2871_v6 = vld [vmem:[%s62_s24] ss:$0 sm:$0xff]  ;;  %v185_v11 = vsel %vm184_vm3, %v183_v9, %v2870_v5  ;;  %s80_s22 = scalar_lea.vmem %s4059_s2, %s3524_s20  ;;  %s2863_s18 = sld [smem:[#allocation2 + $0xc]] }
  0x1e   :  { %v2872_v8 = vld [vmem:[%s65_s8] ss:$0 sm:$0xff]  ;;  %v187_v14 = vsel %vm186_vm4, %v185_v11, %v2871_v6  ;;  %s2864_s24 = sld [smem:[#allocation2 + $0xd]]  ;;  %s2866_s19 = sld [smem:[#allocation2 + $0xf]]  ;;  %v275_v11 = vsub.s32 2, %v3630_v57 }
  0x1f   :  { %v2873_v10 = vld [vmem:[%s68_s27] ss:$0 sm:$0xff]  ;;  %v189_v18 = vsel %vm188_vm5, %v187_v14, %v2872_v8  ;;  %s3460_s13 = smov 64   ;;  %s3462_s25 = smov 112  }
  0x20   :  { %v72_v12 = vld [vmem:[%s71_s28] sm:$0x1]  ;;  %v191_v19 = vsel %vm190_vm6, %v189_v18, %v2873_v10  ;;  %s89_s28 = scalar_lea.vmem %s4059_s2, %s2865_s12  ;;  %v3456_v10 = vmov 0.0   ;;  %s3458_s12 = smov 96  }
  0x21   :  { %v2874_v13 = vld [vmem:[%s74_s0] ss:$0 sm:$0xff]  ;;  %v201_v22 = vadd.f32 %v199_v15, %v191_v19  ;;  %3048 = vmatprep.subr.mxu1 %v3456_v10  ;;  %3058 = vmatprep.subr.mxu0 %v3456_v10  ;;  %v3459_v19 = vmov 1966171168   ;;  %s3463_s26 = smov 48   ;;  %s3465_s21 = smov 8  }
  0x22   :  { %v2875_v16 = vld [vmem:[%s77_s10] ss:$0 sm:$0xff]  ;;  %v192_v17 = vsel %vm178_vm0, %v72_v12, %v2874_v13  ;;  %3060 = vmatprep.mubr.msk.f32.mxu0 %vm3457_vm8, %v3456_v10  ;;  %v276_v12 = vrot.slane %v3638_v61, %v275_v11  ;;  %vm2819_vm0 = vcmask 254976  }
  0x23   :  { %v2876_v20 = vld [vmem:[%s80_s22] ss:$0 sm:$0xff]  ;;  %v193_v21 = vsel %vm180_vm1, %v192_v17, %v2875_v16  ;;  %v204_v23 = vsel %vm203_vm7, %v201_v22, 0.0  ;;  %s83_s8 = scalar_lea.vmem %s4059_s2, %s2863_s18 }
  0x24   :  { %v194_v24 = vsel %vm182_vm2, %v193_v21, %v2876_v20  ;;  %205 = vadd.xlane.f32.xlu0 %v204_v23  ;;  %v2877_v25 = vld [vmem:[%s83_s8] ss:$0 sm:$0xff]  ;;  %s86_s27 = scalar_lea.vmem %s4059_s2, %s2864_s24  ;;  %s92_s0 = scalar_lea.vmem %s4059_s2, %s2866_s19  ;;  %v248_v20 = vunpack.c.l.s4 %v3459_v19 }
  0x25   :  { %v2878_v26 = vld [vmem:[%s86_s27] ss:$0 sm:$0xff]  ;;  %v195_v28 = vsel %vm184_vm3, %v194_v24, %v2877_v25  ;;  %s3461_s8 = smov 80   ;;  %s3464_s27 = smov 32  }
  0x26   :  { %v2879_v27 = vld [vmem:[%s89_s28] ss:$0 sm:$0xff]  ;;  %v196_v30 = vsel %vm186_vm4, %v195_v28, %v2878_v26  ;;  %v249_v23 = vunpack.c.0.s8 %v248_v20 }
  0x27   :  { %v2880_v29 = vld [vmem:[%s92_s0] ss:$0 sm:$0xff]  ;;  %v197_v32 = vsel %vm188_vm5, %v196_v30, %v2879_v27 }
  0x28   :  { %v198_v33 = vsel %vm190_vm6, %v197_v32, %v2880_v29  ;;  %v243_v21 = vld [vmem:[%s4058_s1] sm:$0x3]  ;;  %v252_v25 = vsub.s32 %v249_v23, %v3630_v57 }
  0x29   :  { %v202_v34 = vadd.f32 %v200_v31, %v198_v33 }
  0x2b   :  { %v207_v35 = vsel %vm203_vm7, %v202_v34, 0.0 }
  0x2c   :  { %208 = vadd.xlane.f32.xlu0 %v207_v35 }
  0xb1   :  { %v206_v36 = vpop.xlane.xlu0 %205 }
  0xb2   :  { %v211_v37 = vmul.f32 0.03125, %v206_v36 }
  0xb4   :  { %v213_v38 = vsub.f32 %v201_v22, %v211_v37  ;;  %v244_v22 = vsub.f32 1.0, %v243_v21 }
  0xb6   :  { %v215_v39 = vmul.f32 %v213_v38, %v213_v38  ;;  %v245_v24 = vmul.f32 -1e+09, %v244_v22 }
  0xb8   :  { %v217_v40 = vsel %vm203_vm7, %v215_v39, 0.0  ;;  %v253_v26 = vrot.slane %v245_v24, %v252_v25 }
  0xb9   :  { %218 = vadd.xlane.f32.xlu1 %v217_v40  ;;  %v209_v41 = vpop.xlane.xlu0 %208 }
  0xba   :  { %v212_v42 = vmul.f32 0.03125, %v209_v41  ;;  %v261_v27 = vrot.slane %v253_v26, %v252_v25  ;;  %v254_v28 = vcombine.high %v253_v26, %v253_v26 }
  0xbc   :  { %v214_v43 = vsub.f32 %v202_v34, %v212_v42  ;;  %v3690_v29 = vrot.slane %v261_v27, %v3633_v60  ;;  %v268_v30 = vrot.slane %v254_v28, %v252_v25 }
  0xbe   :  { %v216_v44 = vmul.f32 %v214_v43, %v214_v43  ;;  %v3694_v35 = vrot.slane %v268_v30, %v3633_v60 }
  0xc0   :  { %v220_v45 = vsel %vm203_vm7, %v216_v44, 0.0 }
  0xc1   :  { %221 = vadd.xlane.f32.xlu1 %v220_v45 }
 0x146   :  { %v219_v53 = vpop.xlane.xlu1 %218 }
 0x147   :  { %v223_v54 = vmul.f32 0.03125, %v219_v53 }
 0x149   :  { %v225_v56 = vadd.f32 1e-12, %v223_v54 }
 0x14b   :  { %3354 = vrsqrt.f32 %v225_v56 }
 0x14e   :  { %v222_v58 = vpop.xlane.xlu1 %221 }
 0x14f   :  { %v224_v59 = vmul.f32 0.03125, %v222_v58 }
 0x151   :  { %v226_v62 = vadd.f32 1e-12, %v224_v59 }
 0x153   :  { %3356 = vrsqrt.f32 %v226_v62 }
 0x155   :  { %v3355_v1 = vpop.eup %3354 }
 0x156   :  { %v229_v2 = vmul.f32 %v3355_v1, %v213_v38 }
 0x158   :  { %v235_v4 = vmul.f32 %v234_v0, %v229_v2 }
 0x15a   :  { %v3647_v5 = vadd.f32 %v240_v3, %v235_v4 }
 0x15c   :  { %3045 = vmatprep.mubr.msk.f32.mxu1 %vm203_vm7, %v3647_v5 }
 0x15d   :  { %v3357_v6 = vpop.eup %3356 }
 0x15e   :  { %v230_v7 = vmul.f32 %v3357_v6, %v214_v43 }
 0x160   :  { %v236_v8 = vmul.f32 %v234_v0, %v230_v7 }
 0x162   :  { %v3651_v9 = vadd.f32 %v240_v3, %v236_v8 }
 0x164   :  { %3046 = vmatmul.mubr.msk.f32.vlgmr.msra.gmra.mrb[0].mxu1 %vm203_vm7, %v3651_v9 }
 0x165   :  { %3050 = vmatprep.mubr.msk.f32.mxu1 %vm3457_vm8, %v3456_v10 }
 0x237   :  { %v3047_v13 = vpop.f32.mrb[0].mxu1 }
 0x238   :  { %v3665_v14 = vadd.f32 %v3047_v13, %v276_v12  ;;  %v349_v15 = vpop.f32.mrb[1].mxu1 }
 0x239   :  { %v3667_v16 = vadd.f32 %v349_v15, %v276_v12 }
 0x23a   :  { %437 = vrot.lane.b32.xlu1 %v3665_v14, %s3458_s12 }
 0x23b   :  { %359 = vrot.lane.b32.xlu0 %v3667_v16, %s3458_s12 }
 0x2ac   :  { %v438_v18 = vpop.permute.xlu1 %437 }
 0x2ad   :  { %v360_v17 = vpop.permute.xlu0 %359 }
 0x2ae   :  { %3049 = vmatpush3.xpose.msk.msra.mxu1 %vm361_vm9, %v360_v17 }
 0x2af   :  { %3053 = vmatprep.subr.mxu1 %v3456_v10 }
 0x2b1   :  { %3051 = vmatmul.mubr.msk.f32.vlgmr.msra.gmra.mrb[2].mxu1 %vm361_vm9, %v3667_v16 }
 0x2b2   :  { %3054 = vmatpush3.xpose.msk.msra.mxu1 %vm361_vm9, %v438_v18  ;;  %3055 = vmatprep.mubr.msk.f32.mxu1 %vm3457_vm8, %v3456_v10 }
 0x2b3   :  { %3073 = vmatprep.subr.mxu1 %v3456_v10 }
 0x2b5   :  { %3056 = vmatmul.mubr.msk.f32.vlgmr.msra.gmra.mrb[4].mxu1 %vm361_vm9, %v3665_v14 }
 0x2b6   :  { %3075 = vmatprep.mubr.msk.f32.mxu1 %vm3457_vm8, %v3456_v10 }
 0x384   :  { %v432_v31 = vpop.f32.mrb[2].mxu1 }
 0x385   :  { %v513_v32 = vmul.f32 0.25, %v432_v31  ;;  %v3052_v33 = vpop.f32.mrb[3].mxu1 }
 0x387   :  { %v525_v34 = vadd.f32 %v3690_v29, %v513_v32 }
 0x388   :  { %v509_v36 = vpop.f32.mrb[4].mxu1 }
 0x389   :  { %v514_v37 = vmul.f32 0.25, %v509_v36  ;;  %v3057_v38 = vpop.f32.mrb[5].mxu1  ;;  %v528_v39 = vsel %vm527_vm10, %v525_v34, -inf }
 0x38a   :  { %529 = vmax.xlane.f32.xlu1 %v528_v39 }
 0x38b   :  { %v526_v40 = vadd.f32 %v3694_v35, %v514_v37 }
 0x38d   :  { %v531_v41 = vsel %vm527_vm10, %v526_v40, -inf }
 0x38e   :  { %532 = vmax.xlane.f32.xlu0 %v531_v41 }
 0x39b   :  { %626 = vrot.lane.b32.xlu1 %v3665_v14, %s3460_s13 }
 0x39f   :  { %704 = vrot.lane.b32.xlu1 %v3667_v16, %s3461_s8 }
 0x3a3   :  { %782 = vrot.lane.b32.xlu1 %v3665_v14, %s3461_s8 }
 0x417   :  { %v530_v42 = vpop.xlane.xlu1 %529 }
 0x418   :  { %v534_v43 = vsub.f32 %v525_v34, %v530_v42 }
 0x41a   :  { %v536_v44 = vmul.f32 1.442695, %v534_v43 }
 0x41b   :  { %v627_v45 = vpop.permute.xlu1 %626  ;;  %v533_v50 = vpop.xlane.xlu0 %532 }
 0x41c   :  { %3358 = vpow2.f32 %v536_v44  ;;  %v535_v52 = vsub.f32 %v526_v40, %v533_v50 }
 0x41e   :  { %v538_v53 = vmul.f32 1.442695, %v535_v52 }
 0x41f   :  { %v705_v54 = vpop.permute.xlu1 %704 }
 0x420   :  { %3360 = vpow2.f32 %v538_v53 }
 0x423   :  { %v783_v56 = vpop.permute.xlu1 %782 }
 0x424   :  { %3074 = vmatpush3.xpose.msk.msra.mxu1 %vm361_vm9, %v783_v56 }
 0x425   :  { %3083 = vmatprep.subr.mxu1 %v3456_v10 }
 0x426   :  { %v3359_v58 = vpop.eup %3358 }
 0x427   :  { %v540_v59 = vsel %vm527_vm10, %v3359_v58, 0.0 }
 0x428   :  { %541 = vadd.xlane.f32.xlu0 %v540_v59 }
 0x42a   :  { %v3361_v62 = vpop.eup %3360 }
 0x42b   :  { %v543_v0 = vsel %vm527_vm10, %v3361_v62, 0.0 }
 0x42c   :  { %544 = vadd.xlane.f32.xlu1 %v543_v0 }
 0x43d   :  { %780 = vrot.lane.b32.xlu1 %v3665_v14, %s3462_s25 }
 0x43e   :  { %550 = vrot.lane.b32.xlu0 %v3667_v16, %s3460_s13 }
 0x442   :  { %702 = vrot.lane.b32.xlu0 %v3667_v16, %s3462_s25 }
 0x4b5   :  { %v542_v1 = vpop.xlane.xlu0 %541 }
 0x4b6   :  { %3362 = vrcp.f32 %v542_v1 }
 0x4b9   :  { %v545_v2 = vpop.xlane.xlu1 %544  ;;  %v551_v3 = vpop.permute.xlu0 %550 }
 0x4ba   :  { %3364 = vrcp.f32 %v545_v2  ;;  %3059 = vmatpush3.msra.mxu0 %v551_v3  ;;  %v1216_v2 = vsub.s32 3, %v3630_v57 }
 0x4bb   :  { %3063 = vmatprep.subr.mxu0 %v3456_v10 }
 0x4bc   :  { %v1217_v3 = vrot.slane %v3638_v61, %v1216_v2 }
 0x4bd   :  { %v781_v4 = vpop.permute.xlu1 %780  ;;  %v703_v13 = vpop.permute.xlu0 %702 }
 0x4be   :  { %3076 = vmatmul.mubr.msk.f32.vlgmr.msra.gmra.mrb[6].mxu1 %vm361_vm9, %v781_v4 }
 0x4bf   :  { %3085 = vmatprep.mubr.msk.f32.mxu1 %vm3457_vm8, %v3456_v10 }
 0x4c0   :  { %v3363_v6 = vpop.eup %3362 }
 0x4c1   :  { %v548_v7 = vmul.f32 %v3363_v6, %v3359_v58 }
 0x4c3   :  { %3061 = vmatmul.mubr.msk.f32.vlgmr.msra.gmra.mrb[0].mxu0 %vm527_vm10, %v548_v7 }
 0x4c4   :  { %v3365_v8 = vpop.eup %3364  ;;  %3064 = vmatpush3.msra.mxu0 %v627_v45  ;;  %3065 = vmatprep.mubr.msk.f32.mxu0 %vm3457_vm8, %v3456_v10 }
 0x4c5   :  { %v549_v12 = vmul.f32 %v3365_v8, %v3361_v62  ;;  %3068 = vmatprep.subr.mxu0 %v3456_v10 }
 0x4c7   :  { %3066 = vmatmul.mubr.msk.f32.vlgmr.msra.gmra.mrb[2].mxu0 %vm527_vm10, %v549_v12 }
 0x4c8   :  { %3070 = vmatprep.mubr.msk.f32.mxu0 %vm3457_vm8, %v3456_v10 }
 0x4cb   :  { %3069 = vmatpush3.xpose.msk.msra.mxu0 %vm361_vm9, %v705_v54 }
 0x4cc   :  { %3078 = vmatprep.subr.mxu0 %v3456_v10 }
 0x4ce   :  { %3071 = vmatmul.mubr.msk.f32.vlgmr.msra.gmra.mrb[4].mxu0 %vm361_vm9, %v703_v13 }
 0x4cf   :  { %3080 = vmatprep.mubr.msk.f32.mxu0 %vm3457_vm8, %v3456_v10 }
 0x591   :  { %v854_v15 = vpop.f32.mrb[6].mxu1 }
 0x592   :  { %v859_v17 = vmul.f32 0.25, %v854_v15  ;;  %v3077_v18 = vpop.f32.mrb[7].mxu1 }
 0x594   :  { %v861_v19 = vadd.f32 %v859_v17, %v3694_v35 }
 0x596   :  { %v3732_v20 = vpop.f32.mrb[0].mxu0  ;;  %v865_v21 = vsel %vm527_vm10, %v861_v19, -inf }
 0x597   :  { %v3062_v22 = vpop.f32.mrb[1].mxu0  ;;  %866 = vmax.xlane.f32.xlu1 %v865_v21 }
 0x59a   :  { %v698_v23 = vpop.f32.mrb[2].mxu0 }
 0x59b   :  { %v3067_v24 = vpop.f32.mrb[3].mxu0 }
 0x5a1   :  { %v776_v25 = vpop.f32.mrb[4].mxu0 }
 0x5a2   :  { %v858_v26 = vmul.f32 0.25, %v776_v25  ;;  %v3072_v27 = vpop.f32.mrb[5].mxu0 }
 0x5a3   :  { %v1261_v27 = vld [vmem:[%s4062_s5 + $0x8] sm:$0xff] }
 0x5a4   :  { %v860_v28 = vadd.f32 %v858_v26, %v3690_v29 }
 0x5a6   :  { %v862_v30 = vsel %vm527_vm10, %v860_v28, -inf }
 0x5a7   :  { %863 = vmax.xlane.f32.xlu0 %v862_v30  ;;  %v1262_v30 = vld [vmem:[%s4062_s5 + $0x10] sm:$0xff] }
 0x5a8   :  { %960 = vrot.lane.b32.xlu1 %v3665_v14, %s3463_s26  ;;  %v3334_v14 = vpack.i.bf16 %v3625_v51, %v3616_v48 }
 0x5ac   :  { %3335 = vrot.lane.b32.xlu1 %v3334_v14, %s3464_s27 }
 0x5b0   :  { %3340 = vrot.lane.b32.xlu1 %v3339_v49, %s3464_s27 }
 0x624   :  { %v867_v31 = vpop.xlane.xlu1 %866 }
 0x625   :  { %v869_v32 = vsub.f32 %v861_v19, %v867_v31  ;;  %v1263_v31 = vld [vmem:[%s4062_s5 + $0x18] sm:$0xff] }
 0x627   :  { %v872_v33 = vmul.f32 1.442695, %v869_v32  ;;  %v3254_v32 = vpack.c.bf16 %v1263_v31, %v1262_v30 }
 0x628   :  { %v961_v34 = vpop.permute.xlu1 %960 }
 0x629   :  { %3366 = vpow2.f32 %v872_v33  ;;  %3084 = vmatpush3.msra.mxu1 %v961_v34 }
 0x62c   :  { %v3336_v51 = vpop.permute.xlu1 %3335 }
 0x62d   :  { %v3338_v53 = vunpack.i.h.bf16 %v3336_v51  ;;  %v3337_v54 = vunpack.i.l.bf16 %v3336_v51 }
 0x62f   :  { %v3242_v56 = vpack.c.bf16 %v3338_v53, %v3337_v54  ;;  %v1367_v53 = vld [vmem:[%s4063_s6] sm:$0xff]  ;;  %v1368_v54 = vld [vmem:[%s4063_s6 + $0x8] sm:$0xff] }
 0x630   :  { %v3341_v46 = vpop.permute.xlu1 %3340 }
 0x631   :  { %v3343_v47 = vunpack.i.h.bf16 %v3341_v46  ;;  %v3342_v49 = vunpack.i.l.bf16 %v3341_v46  ;;  %v1369_v46 = vld [vmem:[%s4063_s6 + $0x10] sm:$0xff] }
 0x633   :  { %v3367_v36 = vpop.eup %3366  ;;  %v3246_v58 = vpack.c.bf16 %v3343_v47, %v3342_v49  ;;  %v1370_v47 = vld [vmem:[%s4063_s6 + $0x18] sm:$0xff] }
 0x634   :  { %v864_v37 = vpop.xlane.xlu0 %863  ;;  %v877_v38 = vsel %vm527_vm10, %v3367_v36, 0.0  ;;  %v3262_v49 = vpack.c.bf16 %v1370_v47, %v1369_v46  ;;  %v3842_v47 = vld [vmem:[%s4061_s4 + $0x28] sm:$0xff] }
 0x635   :  { %v868_v39 = vsub.f32 %v860_v28, %v864_v37  ;;  %878 = vadd.xlane.f32.xlu0 %v877_v38 }
 0x637   :  { %v870_v40 = vmul.f32 1.442695, %v868_v39 }
 0x639   :  { %3368 = vpow2.f32 %v870_v40  ;;  %v1250_v40 = vsub.s32 4, %v3630_v57 }
 0x643   :  { %v3369_v41 = vpop.eup %3368 }
 0x644   :  { %v874_v42 = vsel %vm527_vm10, %v3369_v41, 0.0 }
 0x645   :  { %875 = vadd.xlane.f32.xlu0 %v874_v42  ;;  %v1251_v42 = vrot.slane %v3638_v61, %v1250_v40 }
 0x65b   :  { %884 = vrot.lane.b32.xlu0 %v3667_v16, %s3463_s26 }
 0x6c2   :  { %v879_v43 = vpop.xlane.xlu0 %878 }
 0x6c3   :  { %3370 = vrcp.f32 %v879_v43 }
 0x6cd   :  { %v3371_v44 = vpop.eup %3370 }
 0x6ce   :  { %v883_v45 = vmul.f32 %v3371_v44, %v3367_v36 }
 0x6d0   :  { %3086 = vmatmul.mubr.msk.f32.vlgmr.msra.gmra.mrb[8].mxu1 %vm527_vm10, %v883_v45 }
 0x6d2   :  { %v876_v50 = vpop.xlane.xlu0 %875 }
 0x6d3   :  { %3372 = vrcp.f32 %v876_v50 }
 0x6d6   :  { %v885_v16 = vpop.permute.xlu0 %884 }
 0x6d7   :  { %3079 = vmatpush3.msra.mxu0 %v885_v16 }
 0x6d8   :  { %3243 = vmatprep.subr.bf16.mxu0 %v3242_v56 }
 0x6dd   :  { %v3373_v52 = vpop.eup %3372 }
 0x6de   :  { %v882_v48 = vmul.f32 %v3373_v52, %v3369_v41  ;;  %v1256_v41 = vsub.s32 5, %v3630_v57 }
 0x6e0   :  { %3081 = vmatmul.mubr.msk.f32.vlgmr.msra.gmra.mrb[6].mxu0 %vm527_vm10, %v882_v48  ;;  %v1257_v44 = vrot.slane %v3638_v61, %v1256_v41 }
 0x6e1   :  { %3245 = vmatpush3.bf16.msra.mxu0 %v3242_v56  ;;  %v3258_v56 = vpack.c.bf16 %v1368_v54, %v1367_v53 }
 0x6e2   :  { %3247 = vmatprep.subr.bf16.mxu0 %v3246_v58 }
 0x7a3   :  { %v1032_v59 = vpop.f32.mrb[8].mxu1 }
 0x7a4   :  { %v3087_v62 = vpop.f32.mrb[9].mxu1 }
 0x7b3   :  { %v956_v0 = vpop.f32.mrb[6].mxu0 }
 0x7b4   :  { %v3082_v1 = vpop.f32.mrb[7].mxu0  ;;  %3092 = vmatprep.mubr.msk.f32.mxu0 %vm361_vm9, %v956_v0  ;;  %v1373_v0 = vld [vmem:[%s4063_s6 + $0x30] sm:$0xff] }
 0x7b5   :  { %3093 = vmatmul.mubr.msk.f32.vlgmr.msra.gmra.mrb[8].mxu0 %vm361_vm9, %v1032_v59  ;;  %v1372_v59 = vld [vmem:[%s4063_s6 + $0x28] sm:$0xff]  ;;  %v1374_v1 = vld [vmem:[%s4063_s6 + $0x38] sm:$0xff] }
 0x7b6   :  { %3249 = vmatpush3.bf16.msra.mxu0 %v3246_v58  ;;  %3099 = vmatprep.mubr.msk.f32.mxu0 %vm361_vm9, %v3732_v20  ;;  %v1371_v58 = vld [vmem:[%s4063_s6 + $0x20] sm:$0xff] }
 0x7b7   :  { %3259 = vmatprep.subr.bf16.mxu0 %v3258_v56  ;;  %v3266_v62 = vpack.c.bf16 %v1372_v59, %v1371_v58  ;;  %v3849_v58 = vld [vmem:[%s4061_s4 + $0x30] sm:$0xff]  ;;  %v3854_v59 = vld [vmem:[%s4061_s4 + $0x38] sm:$0xff] }
 0x7bd   :  { %3100 = vmatmul.mubr.msk.f32.vlgmr.msra.gmra.mrb[8].mxu0 %vm361_vm9, %v698_v23 }
 0x7be   :  { %3261 = vmatpush3.bf16.msra.mxu0 %v3258_v56 }
 0x7bf   :  { %3263 = vmatprep.subr.bf16.mxu0 %v3262_v49 }
 0x7c2   :  { %3265 = vmatpush3.bf16.msra.mxu0 %v3262_v49 }
 0x7c3   :  { %3267 = vmatprep.subr.bf16.mxu0 %v3266_v62 }
 0x7c6   :  { %3269 = vmatpush3.bf16.msra.mxu0 %v3266_v62  ;;  %v3278_v62 = vpack.c.bf16 %v3854_v59, %v3849_v58 }
 0x890   :  { %v3101_v4 = vpop.f32.mrb[8].mxu0 }
 0x891   :  { %v1219_v6 = vadd.f32 %v3101_v4, %v1217_v3  ;;  %v1205_v7 = vpop.f32.mrb[9].mxu0  ;;  %v1266_v4 = vsub.s32 6, %v3630_v57 }
 0x892   :  { %v1218_v8 = vadd.f32 %v1217_v3, %v1205_v7  ;;  %v3270_v3 = vpack.c.bf16 %v1374_v1, %v1373_v0 }
 0x893   :  { %v1221_v12 = vadd.f32 %v1219_v6, %v3651_v9  ;;  %v1267_v6 = vrot.slane %v3638_v61, %v1266_v4 }
 0x894   :  { %v1220_v13 = vadd.f32 %v1218_v8, %v3647_v5  ;;  %v1260_v5 = vld [vmem:[%s4062_s5] sm:$0xff]  ;;  %3271 = vmatprep.subr.bf16.mxu0 %v3270_v3 }
 0x895   :  { %v1225_v15 = vsel %vm203_vm7, %v1221_v12, 0.0  ;;  %v3250_v28 = vpack.c.bf16 %v1261_v27, %v1260_v5  ;;  %3273 = vmatpush3.bf16.msra.mxu0 %v3270_v3 }
 0x896   :  { %1226 = vadd.xlane.f32.xlu1 %v1225_v15  ;;  %v1222_v17 = vsel %vm203_vm7, %v1220_v13, 0.0  ;;  %3153 = vmatprep.subr.mxu0 %v3456_v10 }
 0x897   :  { %1223 = vadd.xlane.f32.xlu0 %v1222_v17  ;;  %3251 = vmatprep.subr.bf16.mxu1 %v3250_v28 }
 0x898   :  { %3253 = vmatpush3.bf16.msra.mxu1 %v3250_v28 }
 0x899   :  { %3255 = vmatprep.subr.bf16.mxu1 %v3254_v32 }
 0x89c   :  { %3257 = vmatpush3.bf16.msra.mxu1 %v3254_v32 }
 0x923   :  { %v1227_v18 = vpop.xlane.xlu1 %1226 }
 0x924   :  { %v1229_v19 = vmul.f32 0.03125, %v1227_v18  ;;  %v1224_v20 = vpop.xlane.xlu0 %1223 }
 0x925   :  { %v1228_v21 = vmul.f32 0.03125, %v1224_v20 }
 0x926   :  { %v1231_v22 = vsub.f32 %v1221_v12, %v1229_v19 }
 0x927   :  { %v1230_v23 = vsub.f32 %v1220_v13, %v1228_v21 }
 0x928   :  { %v1233_v26 = vmul.f32 %v1231_v22, %v1231_v22 }
 0x929   :  { %v1232_v24 = vmul.f32 %v1230_v23, %v1230_v23 }
 0x92a   :  { %v1237_v9 = vsel %vm203_vm7, %v1233_v26, 0.0 }
 0x92b   :  { %v1234_v25 = vsel %vm203_vm7, %v1232_v24, 0.0 }
 0x92c   :  { %1235 = vadd.xlane.f32.xlu0 %v1234_v25 }
 0x930   :  { %1238 = vadd.xlane.f32.xlu0 %v1237_v9 }
 0x9b9   :  { %v1236_v33 = vpop.xlane.xlu0 %1235 }
 0x9ba   :  { %v1240_v34 = vmul.f32 0.03125, %v1236_v33  ;;  %v1377_v33 = vsub.s32 7, %v3630_v57 }
 0x9bc   :  { %v1242_v36 = vadd.f32 1e-12, %v1240_v34  ;;  %v1378_v34 = vrot.slane %v3638_v61, %v1377_v33 }
 0x9bd   :  { %v1239_v37 = vpop.xlane.xlu0 %1238 }
 0x9be   :  { %3374 = vrsqrt.f32 %v1242_v36  ;;  %v1241_v38 = vmul.f32 0.03125, %v1239_v37 }
 0x9c0   :  { %v1243_v39 = vadd.f32 1e-12, %v1241_v38 }
 0x9c2   :  { %3376 = vrsqrt.f32 %v1243_v39 }
 0x9c8   :  { %v3375_v14 = vpop.eup %3374 }
 0x9c9   :  { %v1246_v43 = vmul.f32 %v3375_v14, %v1230_v23 }
 0x9cb   :  { %v1252_v45 = vmul.f32 %v1251_v42, %v1246_v43 }
 0x9cc   :  { %v3377_v50 = vpop.eup %3376 }
 0x9cd   :  { %v1247_v16 = vmul.f32 %v3377_v50, %v1231_v22  ;;  %v3787_v52 = vadd.f32 %v1257_v44, %v1252_v45 }
 0x9cf   :  { %v1253_v48 = vmul.f32 %v1251_v42, %v1247_v16  ;;  %3110 = vmatprep.mubr.msk.f32.mxu1 %vm203_vm7, %v3787_v52 }
 0x9d1   :  { %v1259_v51 = vadd.f32 %v1257_v44, %v1253_v48 }
 0x9d3   :  { %3111 = vmatmul.mubr.msk.f32.vlgmr.msra.gmra.mrb[10].mxu1 %vm203_vm7, %v1259_v51 }
 0xaa6   :  { %v3112_v7 = vpop.f32.mrb[10].mxu1 }
 0xaa7   :  { %v1346_v8 = vadd.f32 %v3112_v7, %v1267_v6  ;;  %v1340_v12 = vpop.f32.mrb[11].mxu1 }
 0xaa8   :  { %v1341_v13 = vadd.f32 %v1340_v12, %v1267_v6  ;;  %v3862_v12 = vld [vmem:[%s4064_s7 + $0x8] sm:$0xff] }
 0xaa9   :  { %v1350_v15 = vmul.f32 %v1346_v8, %v1346_v8 }
 0xaaa   :  { %v1349_v17 = vmul.f32 %v1341_v13, %v1341_v13 }
 0xaab   :  { %v1352_v18 = vmul.f32 %v1350_v15, %v1346_v8 }
 0xaac   :  { %v1351_v19 = vmul.f32 %v1349_v17, %v1341_v13 }
 0xaad   :  { %v1354_v20 = vmul.f32 0.044715, %v1352_v18 }
 0xaae   :  { %v1353_v21 = vmul.f32 0.044715, %v1351_v19 }
 0xaaf   :  { %v1356_v22 = vadd.f32 %v1354_v20, %v1346_v8  ;;  %v1498_v20 = vrot.slane %v3862_v12, %v3641_v63 }
 0xab0   :  { %v1355_v23 = vadd.f32 %v1353_v21, %v1341_v13 }
 0xab1   :  { %v1358_v24 = vmul.f32 0.7978846, %v1356_v22 }
 0xab2   :  { %v1357_v25 = vmul.f32 0.7978846, %v1355_v23 }
 0xab3   :  { %3378 = vtanh.f32 %v1358_v24 }
 0xab4   :  { %3380 = vtanh.f32 %v1357_v25  ;;  %v1509_v25 = vrot.slane %v3862_v12, %v275_v11 }
 0xabd   :  { %v3379_v26 = vpop.eup %3378 }
 0xabe   :  { %v3381_v9 = vpop.eup %3380  ;;  %v1362_v5 = vadd.f32 1.0, %v3379_v26 }
 0xabf   :  { %v1361_v27 = vadd.f32 1.0, %v3381_v9 }
 0xac0   :  { %v1364_v28 = vmul.f32 0.5, %v1362_v5 }
 0xac1   :  { %v1363_v30 = vmul.f32 0.5, %v1361_v27 }
 0xac2   :  { %v1366_v32 = vmul.f32 %v1364_v28, %v1346_v8 }
 0xac3   :  { %v1365_v31 = vmul.f32 %v1363_v30, %v1341_v13  ;;  %v1492_v13 = vrot.slane %v3862_v12, %v3633_v60 }
 0xac5   :  { %3129 = vmatprep.mubr.msk.f32.mxu0 %vm1379_vm11, %v1365_v31 }
 0xac6   :  { %3130 = vmatmul.mubr.msk.f32.vlgmr.msra.gmra.mrb[10].mxu0 %vm1379_vm11, %v1366_v32 }
 0xac7   :  { %3155 = vmatprep.mubr.msk.f32.mxu0 %vm3457_vm8, %v3456_v10 }
 0xb99   :  { %v3131_v36 = vpop.f32.mrb[10].mxu0 }
 0xb9a   :  { %v1458_v37 = vadd.f32 %v3131_v36, %v1378_v34  ;;  %v1452_v38 = vpop.f32.mrb[11].mxu0 }
 0xb9b   :  { %v1453_v39 = vadd.f32 %v1452_v38, %v1378_v34 }
 0xb9c   :  { %v1462_v42 = vadd.f32 %v1458_v37, %v1259_v51 }
 0xb9d   :  { %v1461_v14 = vadd.f32 %v1453_v39, %v3787_v52  ;;  %v3837_v52 = vld [vmem:[%s4061_s4 + $0x20] sm:$0xff] }
 0xb9e   :  { %v1466_v43 = vsel %vm203_vm7, %v1462_v42, 0.0  ;;  %v3274_v49 = vpack.c.bf16 %v3842_v47, %v3837_v52 }
 0xb9f   :  { %1467 = vadd.xlane.f32.xlu1 %v1466_v43  ;;  %v1463_v44 = vsel %vm203_vm7, %v1461_v14, 0.0 }
 0xba0   :  { %1464 = vadd.xlane.f32.xlu0 %v1463_v44  ;;  %3275 = vmatprep.subr.bf16.mxu1 %v3274_v49 }
 0xba1   :  { %3277 = vmatpush3.bf16.msra.mxu1 %v3274_v49 }
 0xba2   :  { %3279 = vmatprep.subr.bf16.mxu1 %v3278_v62 }
 0xba5   :  { %3281 = vmatpush3.bf16.msra.mxu1 %v3278_v62 }
 0xba6   :  { %3143 = vmatprep.subr.mxu1 %v3456_v10 }
 0xc2c   :  { %v1468_v45 = vpop.xlane.xlu1 %1467 }
 0xc2d   :  { %v1470_v50 = vmul.f32 0.03125, %v1468_v45  ;;  %v1465_v16 = vpop.xlane.xlu0 %1464 }
 0xc2e   :  { %v1469_v48 = vmul.f32 0.03125, %v1465_v16 }
 0xc2f   :  { %v1472_v53 = vsub.f32 %v1462_v42, %v1470_v50 }
 0xc30   :  { %v1471_v54 = vsub.f32 %v1461_v14, %v1469_v48 }
 0xc31   :  { %v1474_v61 = vmul.f32 %v1472_v53, %v1472_v53 }
 0xc32   :  { %v1473_v56 = vmul.f32 %v1471_v54, %v1471_v54 }
 0xc33   :  { %v1478_v46 = vsel %vm203_vm7, %v1474_v61, 0.0 }
 0xc34   :  { %1479 = vadd.xlane.f32.xlu1 %v1478_v46  ;;  %v1475_v51 = vsel %vm203_vm7, %v1473_v56, 0.0 }
 0xc35   :  { %1476 = vadd.xlane.f32.xlu0 %v1475_v51 }
 0xcc1   :  { %v1480_v0 = vpop.xlane.xlu1 %1479 }
 0xcc2   :  { %v1482_v1 = vmul.f32 0.03125, %v1480_v0  ;;  %v1477_v3 = vpop.xlane.xlu0 %1476 }
 0xcc3   :  { %v1481_v6 = vmul.f32 0.03125, %v1477_v3 }
 0xcc4   :  { %v1484_v7 = vadd.f32 1e-12, %v1482_v1 }
 0xcc5   :  { %v1483_v8 = vadd.f32 1e-12, %v1481_v6 }
 0xcc6   :  { %3382 = vrsqrt.f32 %v1484_v7 }
 0xcc7   :  { %3384 = vrsqrt.f32 %v1483_v8 }
 0xcd0   :  { %v3383_v15 = vpop.eup %3382 }
 0xcd1   :  { %v3385_v17 = vpop.eup %3384  ;;  %v1488_v18 = vmul.f32 %v3383_v15, %v1472_v53 }
 0xcd2   :  { %v1487_v19 = vmul.f32 %v3385_v17, %v1471_v54 }
 0xcd3   :  { %v1494_v21 = vmul.f32 %v1492_v13, %v1488_v18 }
 0xcd4   :  { %v1493_v22 = vmul.f32 %v1492_v13, %v1487_v19 }
 0xcd5   :  { %v3870_v24 = vadd.f32 %v1498_v20, %v1494_v21 }
 0xcd6   :  { %v3868_v23 = vadd.f32 %v1498_v20, %v1493_v22 }
 0xcd8   :  { %3140 = vmatprep.mubr.msk.f32.mxu1 %vm203_vm7, %v3868_v23 }
 0xcd9   :  { %3141 = vmatmul.mubr.msk.f32.vlgmr.msra.gmra.mrb[12].mxu1 %vm203_vm7, %v3870_v24 }
 0xcda   :  { %3145 = vmatprep.mubr.msk.f32.mxu1 %vm3457_vm8, %v3456_v10 }
 0xdac   :  { %v3142_v26 = vpop.f32.mrb[12].mxu1 }
 0xdad   :  { %v3881_v9 = vadd.f32 %v3142_v26, %v1509_v25  ;;  %v1582_v5 = vpop.f32.mrb[13].mxu1 }
 0xdae   :  { %v3883_v27 = vadd.f32 %v1582_v5, %v1509_v25 }
 0xdaf   :  { %1669 = vrot.lane.b32.xlu1 %v3881_v9, %s3458_s12 }
 0xdb0   :  { %1592 = vrot.lane.b32.xlu0 %v3883_v27, %s3458_s12 }
 0xe21   :  { %v1670_v30 = vpop.permute.xlu1 %1669 }
 0xe22   :  { %v1593_v28 = vpop.permute.xlu0 %1592 }
 0xe23   :  { %3144 = vmatpush3.xpose.msk.msra.mxu1 %vm361_vm9, %v1593_v28 }
 0xe24   :  { %3148 = vmatprep.subr.mxu1 %v3456_v10 }
 0xe26   :  { %3146 = vmatmul.mubr.msk.f32.vlgmr.msra.gmra.mrb[14].mxu1 %vm361_vm9, %v3883_v27 }
 0xe27   :  { %3149 = vmatpush3.xpose.msk.msra.mxu1 %vm361_vm9, %v1670_v30  ;;  %3150 = vmatprep.mubr.msk.f32.mxu1 %vm3457_vm8, %v3456_v10 }
 0xe28   :  { %3158 = vmatprep.subr.mxu1 %v3456_v10 }
 0xe2a   :  { %3151 = vmatmul.mubr.msk.f32.vlgmr.msra.gmra.mrb[16].mxu1 %vm361_vm9, %v3881_v9 }
 0xe2b   :  { %3160 = vmatprep.mubr.msk.f32.mxu1 %vm3457_vm8, %v3456_v10 }
 0xef9   :  { %v1664_v11 = vpop.f32.mrb[14].mxu1 }
 0xefa   :  { %v1745_v31 = vmul.f32 0.25, %v1664_v11  ;;  %v3147_v32 = vpop.f32.mrb[15].mxu1 }
 0xefc   :  { %v1747_v34 = vadd.f32 %v1745_v31, %v3690_v29 }
 0xefd   :  { %v1741_v36 = vpop.f32.mrb[16].mxu1 }
 0xefe   :  { %v1746_v37 = vmul.f32 0.25, %v1741_v36  ;;  %v3152_v38 = vpop.f32.mrb[17].mxu1  ;;  %v1749_v39 = vsel %vm527_vm10, %v1747_v34, -inf }
 0xeff   :  { %1750 = vmax.xlane.f32.xlu1 %v1749_v39 }
 0xf00   :  { %v1748_v42 = vadd.f32 %v1746_v37, %v3694_v35 }
 0xf02   :  { %v1752_v14 = vsel %vm527_vm10, %v1748_v42, -inf }
 0xf03   :  { %1753 = vmax.xlane.f32.xlu0 %v1752_v14 }
 0xf10   :  { %1847 = vrot.lane.b32.xlu1 %v3881_v9, %s3460_s13 }
 0xf14   :  { %1925 = vrot.lane.b32.xlu1 %v3883_v27, %s3461_s8 }
 0xf18   :  { %2003 = vrot.lane.b32.xlu1 %v3881_v9, %s3461_s8 }
 0xf19   :  { %1771 = vrot.lane.b32.xlu0 %v3883_v27, %s3460_s13 }
 0xf8c   :  { %v1751_v43 = vpop.xlane.xlu1 %1750 }
 0xf8d   :  { %v1755_v44 = vsub.f32 %v1747_v34, %v1751_v43 }
 0xf8f   :  { %v1757_v45 = vmul.f32 1.442695, %v1755_v44 }
 0xf90   :  { %v1848_v50 = vpop.permute.xlu1 %1847  ;;  %v1754_v16 = vpop.xlane.xlu0 %1753 }
 0xf91   :  { %3386 = vpow2.f32 %v1757_v45  ;;  %v1756_v48 = vsub.f32 %v1748_v42, %v1754_v16  ;;  %3159 = vmatpush3.msra.mxu1 %v1848_v50  ;;  %v3349_v45 = vpack.i.bf16 %v3842_v47, %v3837_v52 }
 0xf92   :  { %3168 = vmatprep.subr.mxu1 %v3456_v10 }
 0xf93   :  { %v1759_v53 = vmul.f32 1.442695, %v1756_v48 }
 0xf94   :  { %v1772_v54 = vpop.permute.xlu0 %1771  ;;  %v1926_v49 = vpop.permute.xlu1 %1925 }
 0xf95   :  { %3388 = vpow2.f32 %v1759_v53  ;;  %3154 = vmatpush3.msra.mxu0 %v1772_v54 }
 0xf96   :  { %3163 = vmatprep.subr.mxu0 %v3456_v10 }
 0xf98   :  { %v2004_v62 = vpop.permute.xlu1 %2003 }
 0xf9b   :  { %v3387_v61 = vpop.eup %3386 }
 0xf9c   :  { %v1761_v56 = vsel %vm527_vm10, %v3387_v61, 0.0 }
 0xf9d   :  { %1762 = vadd.xlane.f32.xlu0 %v1761_v56 }
 0xf9f   :  { %v3389_v46 = vpop.eup %3388 }
 0xfa0   :  { %v1764_v51 = vsel %vm527_vm10, %v3389_v46, 0.0 }
 0xfa1   :  { %1765 = vadd.xlane.f32.xlu1 %v1764_v51 }
 0xfb2   :  { %2001 = vrot.lane.b32.xlu1 %v3881_v9, %s3462_s25 }
 0xfb3   :  { %1923 = vrot.lane.b32.xlu0 %v3883_v27, %s3462_s25 }
0x102a   :  { %v1763_v0 = vpop.xlane.xlu0 %1762 }
0x102b   :  { %3390 = vrcp.f32 %v1763_v0 }
0x102e   :  { %v1766_v1 = vpop.xlane.xlu1 %1765  ;;  %v1924_v13 = vpop.permute.xlu0 %1923 }
0x102f   :  { %3392 = vrcp.f32 %v1766_v1 }
0x1032   :  { %v2002_v15 = vpop.permute.xlu1 %2001 }
0x1035   :  { %v3391_v3 = vpop.eup %3390 }
0x1036   :  { %v1769_v6 = vmul.f32 %v3391_v3, %v3387_v61 }
0x1038   :  { %3156 = vmatmul.mubr.msk.f32.vlgmr.msra.gmra.mrb[12].mxu0 %vm527_vm10, %v1769_v6  ;;  %v2438_v6 = vrot.slane %v3862_v12, %v1216_v2 }
0x1039   :  { %v3393_v7 = vpop.eup %3392  ;;  %3164 = vmatpush3.xpose.msk.msra.mxu0 %vm361_vm9, %v1926_v49  ;;  %3165 = vmatprep.mubr.msk.f32.mxu0 %vm3457_vm8, %v3456_v10 }
0x103a   :  { %v1770_v8 = vmul.f32 %v3393_v7, %v3389_v46  ;;  %3173 = vmatprep.subr.mxu0 %v3456_v10 }
0x103c   :  { %3161 = vmatmul.mubr.msk.f32.vlgmr.msra.gmra.mrb[18].mxu1 %vm527_vm10, %v1770_v8  ;;  %3166 = vmatmul.mubr.msk.f32.vlgmr.msra.gmra.mrb[14].mxu0 %vm361_vm9, %v1924_v13 }
0x103d   :  { %3169 = vmatpush3.xpose.msk.msra.mxu1 %vm361_vm9, %v2004_v62  ;;  %3170 = vmatprep.mubr.msk.f32.mxu1 %vm3457_vm8, %v3456_v10 }
0x103e   :  { %3178 = vmatprep.subr.mxu1 %v3456_v10  ;;  %3175 = vmatprep.mubr.msk.f32.mxu0 %vm3457_vm8, %v3456_v10 }
0x1040   :  { %3171 = vmatmul.mubr.msk.f32.vlgmr.msra.gmra.mrb[20].mxu1 %vm361_vm9, %v2002_v15 }
0x1041   :  { %3180 = vmatprep.mubr.msk.f32.mxu1 %vm3457_vm8, %v3456_v10 }
0x110b   :  { %v3937_v17 = vpop.f32.mrb[12].mxu0 }
0x110c   :  { %v3157_v18 = vpop.f32.mrb[13].mxu0 }
0x110f   :  { %v3939_v19 = vpop.f32.mrb[18].mxu1  ;;  %v1997_v20 = vpop.f32.mrb[14].mxu0 }
0x1110   :  { %v2079_v21 = vmul.f32 0.25, %v1997_v20  ;;  %v3162_v22 = vpop.f32.mrb[19].mxu1  ;;  %v3167_v25 = vpop.f32.mrb[15].mxu0 }
0x1112   :  { %v2081_v26 = vadd.f32 %v2079_v21, %v3690_v29 }
0x1113   :  { %v2075_v5 = vpop.f32.mrb[20].mxu1 }
0x1114   :  { %v2080_v28 = vmul.f32 0.25, %v2075_v5  ;;  %v3172_v30 = vpop.f32.mrb[21].mxu1  ;;  %v2083_v11 = vsel %vm527_vm10, %v2081_v26, -inf }
0x1115   :  { %2084 = vmax.xlane.f32.xlu0 %v2083_v11 }
0x1116   :  { %v2082_v31 = vadd.f32 %v2080_v28, %v3694_v35 }
0x1118   :  { %v2086_v32 = vsel %vm527_vm10, %v2082_v31, -inf }
0x1119   :  { %2087 = vmax.xlane.f32.xlu1 %v2086_v32 }
0x112a   :  { %2181 = vrot.lane.b32.xlu1 %v3881_v9, %s3463_s26  ;;  %v3344_v9 = vpack.i.bf16 %v3854_v59, %v3849_v58 }
0x112e   :  { %3345 = vrot.lane.b32.xlu1 %v3344_v9, %s3464_s27 }
0x1132   :  { %3350 = vrot.lane.b32.xlu1 %v3349_v45, %s3464_s27  ;;  %v2478_v45 = vrot.slane %v3862_v12, %v1256_v41  ;;  %v2932_v41 = vld [vmem:[%s4063_s6 + $0x48] sm:$0xff] }
0x11a2   :  { %v2085_v34 = vpop.xlane.xlu0 %2084 }
0x11a3   :  { %v2089_v36 = vsub.f32 %v2081_v26, %v2085_v34  ;;  %v2927_v34 = vld [vmem:[%s4062_s5 + $0x30] sm:$0xff] }
0x11a5   :  { %v2091_v37 = vmul.f32 1.442695, %v2089_v36  ;;  %v2928_v36 = vld [vmem:[%s4062_s5 + $0x38] sm:$0xff] }
0x11a6   :  { %v2088_v38 = vpop.xlane.xlu1 %2087 }
0x11a7   :  { %3394 = vpow2.f32 %v2091_v37  ;;  %v2090_v29 = vsub.f32 %v2082_v31, %v2088_v38  ;;  %v2926_v31 = vld [vmem:[%s4062_s5 + $0x28] sm:$0xff]  ;;  %v3294_v37 = vpack.c.bf16 %v2928_v36, %v2927_v34 }
0x11a9   :  { %v2093_v39 = vmul.f32 1.442695, %v2090_v29 }
0x11aa   :  { %v2182_v42 = vpop.permute.xlu1 %2181 }
0x11ab   :  { %3396 = vpow2.f32 %v2093_v39  ;;  %3179 = vmatpush3.msra.mxu1 %v2182_v42 }
0x11ae   :  { %v3346_v48 = vpop.permute.xlu1 %3345 }
0x11af   :  { %v3348_v53 = vunpack.i.h.bf16 %v3346_v48  ;;  %v3347_v54 = vunpack.i.l.bf16 %v3346_v48 }
0x11b1   :  { %v3395_v14 = vpop.eup %3394 }
0x11b2   :  { %v2095_v43 = vsel %vm527_vm10, %v3395_v14, 0.0  ;;  %v3351_v56 = vpop.permute.xlu1 %3350 }
0x11b3   :  { %2096 = vadd.xlane.f32.xlu0 %v2095_v43  ;;  %v3353_v58 = vunpack.i.h.bf16 %v3351_v56  ;;  %v3352_v59 = vunpack.i.l.bf16 %v3351_v56  ;;  %v2933_v56 = vld [vmem:[%s4063_s6 + $0x50] sm:$0xff] }
0x11b5   :  { %v3397_v35 = vpop.eup %3396  ;;  %v3286_v49 = vpack.c.bf16 %v3353_v58, %v3352_v59  ;;  %v2935_v58 = vld [vmem:[%s4063_s6 + $0x60] sm:$0xff]  ;;  %v2936_v59 = vld [vmem:[%s4063_s6 + $0x68] sm:$0xff] }
0x11b6   :  { %v2098_v44 = vsel %vm527_vm10, %v3397_v35, 0.0 }
0x11b7   :  { %2099 = vadd.xlane.f32.xlu0 %v2098_v44 }
0x11cd   :  { %2105 = vrot.lane.b32.xlu0 %v3883_v27, %s3463_s26  ;;  %v3282_v27 = vpack.c.bf16 %v3348_v53, %v3347_v54 }
0x1240   :  { %v2097_v50 = vpop.xlane.xlu0 %2096 }
0x1241   :  { %3398 = vrcp.f32 %v2097_v50 }
0x1244   :  { %v2100_v16 = vpop.xlane.xlu0 %2099 }
0x1245   :  { %3400 = vrcp.f32 %v2100_v16 }
0x1248   :  { %v2106_v61 = vpop.permute.xlu0 %2105 }
0x1249   :  { %3174 = vmatpush3.msra.mxu0 %v2106_v61 }
0x124a   :  { %3283 = vmatprep.subr.bf16.mxu0 %v3282_v27 }
0x124b   :  { %v3399_v46 = vpop.eup %3398 }
0x124c   :  { %v2103_v51 = vmul.f32 %v3399_v46, %v3395_v14  ;;  %v2934_v46 = vld [vmem:[%s4063_s6 + $0x58] sm:$0xff] }
0x124e   :  { %3176 = vmatmul.mubr.msk.f32.vlgmr.msra.gmra.mrb[16].mxu0 %vm527_vm10, %v2103_v51  ;;  %v3306_v51 = vpack.c.bf16 %v2936_v59, %v2935_v58 }
0x124f   :  { %v3401_v52 = vpop.eup %3400  ;;  %3285 = vmatpush3.bf16.msra.mxu0 %v3282_v27 }
0x1250   :  { %v2104_v47 = vmul.f32 %v3401_v52, %v3397_v35  ;;  %3287 = vmatprep.subr.bf16.mxu0 %v3286_v49  ;;  %v2472_v35 = vrot.slane %v3862_v12, %v1250_v40  ;;  %v2931_v40 = vld [vmem:[%s4063_s6 + $0x40] sm:$0xff]  ;;  %v2938_v52 = vld [vmem:[%s4063_s6 + $0x78] sm:$0xff] }
0x1251   :  { %v3298_v27 = vpack.c.bf16 %v2932_v41, %v2931_v40 }
0x1252   :  { %3181 = vmatmul.mubr.msk.f32.vlgmr.msra.gmra.mrb[22].mxu1 %vm527_vm10, %v2104_v47 }
0x1321   :  { %v2177_v62 = vpop.f32.mrb[16].mxu0 }
0x1322   :  { %v3177_v0 = vpop.f32.mrb[17].mxu0  ;;  %3187 = vmatprep.mubr.msk.f32.mxu0 %vm361_vm9, %v2177_v62  ;;  %v2489_v62 = vrot.slane %v3862_v12, %v1266_v4 }
0x1325   :  { %v2253_v1 = vpop.f32.mrb[22].mxu1 }
0x1326   :  { %v3182_v3 = vpop.f32.mrb[23].mxu1  ;;  %3188 = vmatmul.mubr.msk.f32.vlgmr.msra.gmra.mrb[18].mxu0 %vm361_vm9, %v2253_v1 }
0x1327   :  { %3289 = vmatpush3.bf16.msra.mxu0 %v3286_v49  ;;  %3194 = vmatprep.mubr.msk.f32.mxu0 %vm361_vm9, %v3937_v17  ;;  %v2937_v49 = vld [vmem:[%s4063_s6 + $0x70] sm:$0xff] }
0x1328   :  { %3299 = vmatprep.subr.bf16.mxu0 %v3298_v27  ;;  %v3310_v47 = vpack.c.bf16 %v2938_v52, %v2937_v49 }
0x132e   :  { %3195 = vmatmul.mubr.msk.f32.vlgmr.msra.gmra.mrb[18].mxu0 %vm361_vm9, %v3939_v19 }
0x132f   :  { %3301 = vmatpush3.bf16.msra.mxu0 %v3298_v27 }
0x1401   :  { %v3196_v7 = vpop.f32.mrb[18].mxu0 }
0x1402   :  { %v2440_v8 = vadd.f32 %v3196_v7, %v2438_v6  ;;  %v2426_v13 = vpop.f32.mrb[19].mxu0 }
0x1403   :  { %v2439_v15 = vadd.f32 %v2438_v6, %v2426_v13 }
0x1404   :  { %v2442_v18 = vadd.f32 %v2440_v8, %v3870_v24 }
0x1405   :  { %v2441_v20 = vadd.f32 %v2439_v15, %v3868_v23  ;;  %v2925_v23 = vld [vmem:[%s4062_s5 + $0x20] sm:$0xff] }
0x1406   :  { %v2446_v21 = vsel %vm203_vm7, %v2442_v18, 0.0  ;;  %v3290_v32 = vpack.c.bf16 %v2926_v31, %v2925_v23 }
0x1407   :  { %2447 = vadd.xlane.f32.xlu1 %v2446_v21  ;;  %v2443_v17 = vsel %vm203_vm7, %v2441_v20, 0.0 }
0x1408   :  { %2444 = vadd.xlane.f32.xlu0 %v2443_v17  ;;  %3291 = vmatprep.subr.bf16.mxu1 %v3290_v32 }
0x1409   :  { %3293 = vmatpush3.bf16.msra.mxu1 %v3290_v32 }
0x140a   :  { %3295 = vmatprep.subr.bf16.mxu1 %v3294_v37 }
0x140d   :  { %3297 = vmatpush3.bf16.msra.mxu1 %v3294_v37 }
0x1494   :  { %v2448_v22 = vpop.xlane.xlu1 %2447 }
0x1495   :  { %v2450_v19 = vmul.f32 0.03125, %v2448_v22  ;;  %v2445_v25 = vpop.xlane.xlu0 %2444 }
0x1496   :  { %v2449_v26 = vmul.f32 0.03125, %v2445_v25 }
0x1497   :  { %v2452_v5 = vsub.f32 %v2442_v18, %v2450_v19 }
0x1498   :  { %v2451_v2 = vsub.f32 %v2441_v20, %v2449_v26 }
0x1499   :  { %v2454_v11 = vmul.f32 %v2452_v5, %v2452_v5 }
0x149a   :  { %v2453_v28 = vmul.f32 %v2451_v2, %v2451_v2 }
0x149b   :  { %v2458_v24 = vsel %vm203_vm7, %v2454_v11, 0.0 }
0x149c   :  { %v2455_v30 = vsel %vm203_vm7, %v2453_v28, 0.0 }
0x149d   :  { %2456 = vadd.xlane.f32.xlu0 %v2455_v30 }
0x14a1   :  { %2459 = vadd.xlane.f32.xlu0 %v2458_v24  ;;  %v2601_v24 = vrot.slane %v3862_v12, %v1377_v33 }
0x152a   :  { %v2457_v38 = vpop.xlane.xlu0 %2456 }
0x152b   :  { %v2461_v29 = vmul.f32 0.03125, %v2457_v38 }
0x152d   :  { %v2463_v39 = vadd.f32 1e-12, %v2461_v29 }
0x152e   :  { %v2460_v42 = vpop.xlane.xlu0 %2459 }
0x152f   :  { %3402 = vrsqrt.f32 %v2463_v39  ;;  %v2462_v14 = vmul.f32 0.03125, %v2460_v42 }
0x1531   :  { %v2464_v43 = vadd.f32 1e-12, %v2462_v14 }
0x1533   :  { %3404 = vrsqrt.f32 %v2464_v43 }
0x1539   :  { %v3403_v44 = vpop.eup %3402 }
0x153a   :  { %v2467_v9 = vmul.f32 %v3403_v44, %v2451_v2 }
0x153c   :  { %v2473_v50 = vmul.f32 %v2472_v35, %v2467_v9 }
0x153d   :  { %v3405_v16 = vpop.eup %3404 }
0x153e   :  { %v2468_v48 = vmul.f32 %v3405_v16, %v2452_v5  ;;  %v2479_v53 = vadd.f32 %v2478_v45, %v2473_v50  ;;  %v3416_v50 = vld [vmem:[%s4058_s1] sm:$0x3]  ;;  %v3466_v16 = vmov 0.0|0.0  }
0x153f   :  { %3314 = vmatprep.subr.bf16.mxu1 %v3466_v16 }
0x1540   :  { %v2474_v54 = vmul.f32 %v2472_v35, %v2468_v48  ;;  %3205 = vmatprep.mubr.msk.f32.mxu1 %vm203_vm7, %v2479_v53  ;;  %v2729_v48 = vadd.s32 1, %v3630_v57 }
0x1542   :  { %v2480_v61 = vadd.f32 %v2478_v45, %v2474_v54  ;;  %v2727_v54 = vmul.u32 8, %v3630_v57  ;;  %v45_v57 = vld [vmem:[%s4064_s7 + $0x10] sm:$0x3]  ;;  %s3467_s7 = smov [#allocation5]  }
0x1543   :  { %v2714_v49 = vrot.slane %v45_v57, %v3633_v60  ;;  %s2827_s22 = sshll.u32 %s3467_s7, 4  ;;  %s2828_s22 = int_to_ptr.vmem [resolvable:$true] %s2827_s22 }
0x1544   :  { %3206 = vmatmul.mubr.msk.f32.vlgmr.msra.gmra.mrb[24].mxu1 %vm203_vm7, %v2480_v61  ;;  %s3429_s4 = scalar_lea.vmem %s2828_s22, 32  ;;  %p3434_p6 = scmp.lt.s32.totalorder %s2828_s22, %s2828_s22 }
0x1545   :  { %3231 = vmatprep.mubr.msk.f32.mxu1 %vm3457_vm8, %v3456_v10  ;;  %v3302_v10 = vpack.c.bf16 %v2934_v46, %v2933_v56  ;;  %p3430_p5 = scmp.ne.s32.totalorder %s2828_s22, %s3429_s4  ;;  %p3435_p7 = scmp.lt.s32.totalorder %s3429_s4, %s3429_s4 }
0x1547   :  { %3303 = vmatprep.subr.bf16.mxu0 %v3302_v10  ;;  %p3436_p8 = por %p3435_p7, %p3434_p6 }
0x1548   :  { %3305 = vmatpush3.bf16.msra.mxu0 %v3302_v10 }
0x1549   :  { %3307 = vmatprep.subr.bf16.mxu0 %v3306_v51  ;;  %p3437_p9 = pnand %p3436_p8, %p3430_p5 }
0x154c   :  { %3309 = vmatpush3.bf16.msra.mxu0 %v3306_v51 }
0x154d   :  { %3311 = vmatprep.subr.bf16.mxu0 %v3310_v47 }
0x1550   :  { %3313 = vmatpush3.bf16.msra.mxu0 %v3310_v47 }
0x1617   :  { %v3207_v0 = vpop.f32.mrb[24].mxu1 }
0x1618   :  { %v2568_v1 = vadd.f32 %v3207_v0, %v2489_v62  ;;  %v2562_v3 = vpop.f32.mrb[25].mxu1  ;;  %v2720_v0 = vrot.slane %v45_v57, %v3641_v63 }
0x1619   :  { %v2563_v6 = vadd.f32 %v2562_v3, %v2489_v62 }
0x161a   :  { %v2572_v7 = vmul.f32 %v2568_v1, %v2568_v1 }
0x161b   :  { %v2571_v8 = vmul.f32 %v2563_v6, %v2563_v6 }
0x161c   :  { %v2574_v13 = vmul.f32 %v2572_v7, %v2568_v1 }
0x161d   :  { %v2573_v15 = vmul.f32 %v2571_v8, %v2563_v6 }
0x161e   :  { %v2576_v18 = vmul.f32 0.044715, %v2574_v13 }
0x161f   :  { %v2575_v20 = vmul.f32 0.044715, %v2573_v15 }
0x1620   :  { %v2578_v21 = vadd.f32 %v2576_v18, %v2568_v1 }
0x1621   :  { %v2577_v17 = vadd.f32 %v2575_v20, %v2563_v6 }
0x1622   :  { %v2580_v22 = vmul.f32 0.7978846, %v2578_v21 }
0x1623   :  { %v2579_v19 = vmul.f32 0.7978846, %v2577_v17 }
0x1624   :  { %3406 = vtanh.f32 %v2580_v22 }
0x1625   :  { %3408 = vtanh.f32 %v2579_v19 }
0x162e   :  { %v3407_v25 = vpop.eup %3406 }
0x162f   :  { %v3409_v26 = vpop.eup %3408  ;;  %v2584_v5 = vadd.f32 1.0, %v3407_v25 }
0x1630   :  { %v2583_v4 = vadd.f32 1.0, %v3409_v26 }
0x1631   :  { %v2586_v2 = vmul.f32 0.5, %v2584_v5 }
0x1632   :  { %v2585_v28 = vmul.f32 0.5, %v2583_v4 }
0x1633   :  { %v2588_v11 = vmul.f32 %v2586_v2, %v2568_v1 }
0x1634   :  { %v2587_v30 = vmul.f32 %v2585_v28, %v2563_v6 }
0x1636   :  { %3224 = vmatprep.mubr.msk.f32.mxu0 %vm1379_vm11, %v2587_v30 }
0x1637   :  { %3225 = vmatmul.mubr.msk.f32.vlgmr.msra.gmra.mrb[20].mxu0 %vm1379_vm11, %v2588_v11 }
0x170a   :  { %v3226_v23 = vpop.f32.mrb[20].mxu0 }
0x170b   :  { %v2680_v31 = vadd.f32 %v3226_v23, %v2601_v24  ;;  %v2674_v32 = vpop.f32.mrb[21].mxu0 }
0x170c   :  { %v2675_v34 = vadd.f32 %v2674_v32, %v2601_v24 }
0x170d   :  { %v2684_v36 = vadd.f32 %v2680_v31, %v2480_v61  ;;  %v2730_v61 = vmul.u32 8, %v2729_v48 }
0x170e   :  { %v2683_v37 = vadd.f32 %v2675_v34, %v2479_v53  ;;  %v2726_v53 = vand.u32 127, %v231_v55 }
0x170f   :  { %v2688_v38 = vsel %vm203_vm7, %v2684_v36, 0.0 }
0x1710   :  { %2689 = vadd.xlane.f32.xlu1 %v2688_v38  ;;  %v2685_v29 = vsel %vm203_vm7, %v2683_v37, 0.0  ;;  %vm2728_vm12 = vcmp.ge.s32.totalorder %v2726_v53, %v2727_v54  ;;  %vm2731_vm13 = vcmp.lt.s32.totalorder %v2726_v53, %v2730_v61 }
0x1711   :  { %2686 = vadd.xlane.f32.xlu0 %v2685_v29  ;;  %vm2732_vm14 = vmand %vm2728_vm12, %vm2731_vm13 }
0x179d   :  { %v2690_v39 = vpop.xlane.xlu1 %2689 }
0x179e   :  { %v2692_v42 = vmul.f32 0.03125, %v2690_v39  ;;  %v2687_v14 = vpop.xlane.xlu0 %2686 }
0x179f   :  { %v2691_v43 = vmul.f32 0.03125, %v2687_v14 }
0x17a0   :  { %v2694_v35 = vsub.f32 %v2684_v36, %v2692_v42 }
0x17a1   :  { %v2693_v44 = vsub.f32 %v2683_v37, %v2691_v43 }
0x17a2   :  { %v2696_v9 = vmul.f32 %v2694_v35, %v2694_v35 }
0x17a3   :  { %v2695_v33 = vmul.f32 %v2693_v44, %v2693_v44 }
0x17a4   :  { %v2700_v12 = vsel %vm203_vm7, %v2696_v9, 0.0 }
0x17a5   :  { %2701 = vadd.xlane.f32.xlu1 %v2700_v12  ;;  %v2697_v45 = vsel %vm203_vm7, %v2695_v33, 0.0 }
0x17a6   :  { %2698 = vadd.xlane.f32.xlu0 %v2697_v45 }
0x17bc   :  { %2734 = vrot.lane.b32.xlu0 %v3416_v50, %s3465_s21 }
0x1832   :  { %v2702_v40 = vpop.xlane.xlu1 %2701 }
0x1833   :  { %v2704_v41 = vmul.f32 0.03125, %v2702_v40  ;;  %v2699_v27 = vpop.xlane.xlu0 %2698 }
0x1834   :  { %v2703_v56 = vmul.f32 0.03125, %v2699_v27 }
0x1835   :  { %v2706_v46 = vadd.f32 1e-12, %v2704_v41 }
0x1836   :  { %v2705_v10 = vadd.f32 1e-12, %v2703_v56 }
0x1837   :  { %3410 = vrsqrt.f32 %v2706_v46  ;;  %v2735_v58 = vpop.permute.xlu0 %2734 }
0x1838   :  { %3412 = vrsqrt.f32 %v2705_v10  ;;  %v2737_v59 = vsel %vm527_vm10, %v3416_v50, %v2735_v58 }
0x1839   :  { %v2738_v51 = vsel %vm2732_vm14, %v2737_v59, 0.0 }
0x183a   :  { %v2813_v55 = vsel %vm2812_vm15, %v2738_v51, 0.0 }
0x183b   :  { %2814 = vadd.xlane.f32.xlu1 %v2813_v55 }
0x1841   :  { %v3411_v52 = vpop.eup %3410 }
0x1842   :  { %v3413_v47 = vpop.eup %3412  ;;  %v2710_v62 = vmul.f32 %v3411_v52, %v2694_v35 }
0x1843   :  { %v2709_v1 = vmul.f32 %v3413_v47, %v2693_v44 }
0x1844   :  { %v2716_v3 = vmul.f32 %v2714_v49, %v2710_v62 }
0x1845   :  { %v2715_v6 = vmul.f32 %v2714_v49, %v2709_v1 }
0x1846   :  { %v2722_v7 = vadd.f32 %v2720_v0, %v2716_v3 }
0x1847   :  { %v2721_v8 = vadd.f32 %v2720_v0, %v2715_v6 }
0x1849   :  { %v3315_v13 = vpack.c.bf16 %v2722_v7, %v2721_v8 }
0x184b   :  { %3316 = vmatpush3.bf16.msra.mxu1 %v3315_v13 }
0x184e   :  { %3232 = vmatmul.mubr.msk.f32.vlgmr.msra.gmra.mrb[26].mxu1 %vm361_vm9, %v2738_v51 }
0x18c8   :  { %v2815_v15 = vpop.xlane.xlu1 %2814 }
0x18c9   :  { %v2816_v18 = vmax.f32 %v2815_v15, 1e-09 }
0x18cb   :  { %3414 = vrcp.f32 %v2816_v18 }
0x18d5   :  { %v3415_v60 = vpop.eup %3414 }
0x1921   :  { %v2808_v20 = vpop.f32.mrb[26].mxu1 }
0x1922   :  { %v2818_v21 = vmul.f32 %v3415_v60, %v2808_v20  ;;  %v3233_v17 = vpop.f32.mrb[27].mxu1 }
0x1924   :  { %2820 = vst.msk [vmem:[#allocation5] sm:$0x3] %vm2819_vm0, %v2818_v21 }
0x1925   :  { %3440 = shalt.err (!%p3437_p9)
}
0x1926   :  { %s4068_s8 = sld [smem:[#allocation8_spill]] }
0x192c   :  { %s3441_s25 = scalar_lea.hbm %s4068_s8, 32 }
0x192d   :  { %p3442_p10 = scmp.ne.s32.totalorder %s4068_s8, %s3441_s25  ;;  %p3445_p11 = scmp.lt.u32.totalorder %s3441_s25, %s4068_s8 }
0x192f   :  { %p3447_p12 = pnand %p3445_p11, %p3442_p10 }
0x1931   :  { %3450 = shalt.err (!%p3447_p12)
}
0x1932   :  { %2830 = dma.vmem_to_hbm [thread:$0]  %s2828_s22, 32, %s4068_s8, [#allocation3]  }
0x1933   :  { %3453 = dma.done.wait [#allocation3], 32  }
0x1934   :  { %3454 = vsyncadd [#allocation3], 4294967264 }
0x1935   :  { %2834 = vsyncpa [#allocation3], 1 }
0x1936   :  { %2835 = vsyncpa [#allocation4], 1 }

</bundles_post_ra>
